<compile_context>
chip_gen: v5e
topology: v5e:2x2
jax: 0.10.0
libtpu: 0.0.40
codegen_flags: <defaults>
</compile_context>

<pallas_src>
import jax
import jax.numpy as jnp
import numpy as np
from jax import lax
from jax.experimental import pallas as pl
from jax.experimental.pallas import tpu as pltpu

HIDDEN_DIM = 10
LAYER_DIM = 3
GATE_PAD = 32               # lane stride per gate (gate g at [g*32, g*32+H))
GP = 4 * GATE_PAD           # padded gate width = 128 -> one vreg; order i,f,g,o


# --------------------------------------------------------------------------
# Kernel
# --------------------------------------------------------------------------
def _make_ann_kernel(T, Bp, H):
    """Build the LSTM kernel as a closure over static T (seq len),
    Bp (padded batch, multiple of 8) and H (hidden size)."""

    def kernel(x_ref, w0x_ref, w0h_ref, b0_ref,
               w1i_ref, w1r_ref, b1_ref,
               w2i_ref, w2r_ref, b2_ref,
               fcw_ref, fcb_ref, out_ref, xp_ref):
        # (1) Layer-0 input projection (+ pre-scaled bias) for every timestep
        #     with one batched MXU call; stored in VMEM scratch so it never
        #     occupies vregs across the unrolled recurrence.
        xp_ref[...] = (jnp.dot(x_ref[...], w0x_ref[...],
                               preferred_element_type=jnp.float32)
                       + b0_ref[...])

        # (2) Hoisted broadcasts (JAX does not CSE broadcast_in_dim):
        #     per-lane FMA constants that turn one tanh into sigmoid on the
        #     i/f/o gate lanes and leave the g gate lanes untouched, plus the
        #     layer-1/2 biases.
        lane = lax.broadcasted_iota(jnp.int32, (Bp, GP), 1)
        is_g_gate = (lane >= 2 * GATE_PAD) & (lane < 3 * GATE_PAD)
        act_scale = jnp.where(is_g_gate, 1.0, 0.5).astype(jnp.float32)
        act_off = jnp.where(is_g_gate, 0.0, 0.5).astype(jnp.float32)
        b1 = jnp.broadcast_to(b1_ref[...], (Bp, GP))
        b2 = jnp.broadcast_to(b2_ref[...], (Bp, GP))

        def cell(gates, c):
            # ONE EUP push for all four gate activations: i/f/o columns of
            # W and b were pre-scaled by 0.5 in prepare_params, so
            # sigmoid(z) = 0.5*tanh(0.5*z) + 0.5 falls out of a single
            # masked FMA on the tanh of the full (Bp, 128) gates vreg.
            th = jnp.tanh(gates)
            a = th * act_scale + act_off
            i = a[:, 0 * GATE_PAD:0 * GATE_PAD + H]
            f = a[:, 1 * GATE_PAD:1 * GATE_PAD + H]
            g = a[:, 2 * GATE_PAD:2 * GATE_PAD + H]
            o = a[:, 3 * GATE_PAD:3 * GATE_PAD + H]
            c_new = f * c + i * g
            h_new = o * jnp.tanh(c_new)
            return h_new, c_new

        zeros = jnp.zeros((Bp, H), jnp.float32)
        h0 = c0 = h1 = c1 = h2 = c2 = zeros        # init_hiddenState -> zeros

        # (3) Fully unrolled time loop (T small & static): exposes the
        #     layer/time wavefront to the scheduler, static slices of xp.
        for t in range(T):
            xg = xp_ref[t * Bp:(t + 1) * Bp, :]    # (Bp, GP) static slice
            g0 = xg + jnp.dot(h0, w0h_ref[...],
                              preferred_element_type=jnp.float32)
            h0, c0 = cell(g0, c0)

            # (4) layers 1/2: concat-free -- two back-to-back K=10 dots + add.
            g1 = (jnp.dot(h0, w1i_ref[...], preferred_element_type=jnp.float32)
                  + jnp.dot(h1, w1r_ref[...],
                            preferred_element_type=jnp.float32)
                  + b1)
            h1, c1 = cell(g1, c1)

            g2 = (jnp.dot(h1, w2i_ref[...], preferred_element_type=jnp.float32)
                  + jnp.dot(h2, w2r_ref[...],
                            preferred_element_type=jnp.float32)
                  + b2)
            h2, c2 = cell(g2, c2)

        # Linear head on the top-layer hidden state at t = T-1.
        out_ref[...] = (jnp.dot(h2, fcw_ref[...],
                                preferred_element_type=jnp.float32)
                        + fcb_ref[...])

    return kernel


# --------------------------------------------------------------------------
# Parameter handling
# --------------------------------------------------------------------------
def init_params(key, inputs, outputs, hidden=HIDDEN_DIM):
    """Deterministic init mimicking PyTorch LSTM/Linear shapes (weights stored
    pre-transposed, the two LSTM biases summed — equivalent for forward)."""
    bound = 1.0 / np.sqrt(hidden)
    keys = jax.random.split(key, 16)
    ki = iter(keys)

    def u(k, shape):
        return jax.random.uniform(k, shape, jnp.float32, -bound, bound)

    params = {}
    in_sizes = [inputs, hidden, hidden]
    for l in range(LAYER_DIM):
        params[f"w_ih{l}"] = u(next(ki), (in_sizes[l], 4 * hidden))
        params[f"w_hh{l}"] = u(next(ki), (hidden, 4 * hidden))
        b_ih = u(next(ki), (1, 4 * hidden))
        b_hh = u(next(ki), (1, 4 * hidden))
        params[f"b{l}"] = b_ih + b_hh
    fb = 1.0 / np.sqrt(hidden)
    params["fc_w"] = jax.random.uniform(next(ki), (hidden, outputs),
                                        jnp.float32, -fb, fb)
    params["fc_b"] = jax.random.uniform(next(ki), (1, outputs),
                                        jnp.float32, -fb, fb)
    return params


def _pad_gate_cols(w, hidden):
    """(rows, 4H) -> (rows, GP) with gate g in cols [g*32, g*32+H), rest 0."""
    rows = w.shape[0]
    out = jnp.zeros((rows, GP), jnp.float32)
    for g in range(4):
        out = out.at[:, g * GATE_PAD:g * GATE_PAD + hidden].set(
            w[:, g * hidden:(g + 1) * hidden])
    return out


def _prescale_ifo(a):
    """Multiply the i/f/o gate blocks by 0.5 (g block untouched) so the kernel
    can realize sigmoid with a single tanh + masked FMA.  Pad columns are zero
    so scaling whole 32-lane blocks is harmless."""
    scale = np.full((1, GP), 0.5, np.float32)
    scale[:, 2 * GATE_PAD:3 * GATE_PAD] = 1.0     # g gate: unscaled
    return a * jnp.asarray(scale)


def prepare_params(params, hidden=HIDDEN_DIM):
    """Repack logical params into the lane-aligned, pre-scaled kernel layout."""
    kp = {
        "w0x": _prescale_ifo(_pad_gate_cols(params["w_ih0"], hidden)),  # (I,GP)
        "w0h": _prescale_ifo(_pad_gate_cols(params["w_hh0"], hidden)),  # (H,GP)
        "b0": _prescale_ifo(_pad_gate_cols(params["b0"], hidden)),      # (1,GP)
        "fcw": params["fc_w"],                                          # (H,O)
        "fcb": params["fc_b"],                                          # (1,O)
    }
    for l in (1, 2):
        kp[f"w{l}i"] = _prescale_ifo(_pad_gate_cols(params[f"w_ih{l}"], hidden))
        kp[f"w{l}r"] = _prescale_ifo(_pad_gate_cols(params[f"w_hh{l}"], hidden))
        kp[f"b{l}"] = _prescale_ifo(_pad_gate_cols(params[f"b{l}"], hidden))
    return kp


# --------------------------------------------------------------------------
# Wrapper
# --------------------------------------------------------------------------
@jax.jit
def ann_forward(x, kp):
    """x: (B, T, I) float32 (batch_first).  Returns (B, O) float32."""
    B, T, I = x.shape
    Bp = max(8, ((B + 7) // 8) * 8)                 # pad batch to full sublanes
    O = kp["fcb"].shape[1]

    xb = jnp.zeros((Bp, T, I), jnp.float32).at[:B].set(x)
    x_tm = jnp.transpose(xb, (1, 0, 2)).reshape(T * Bp, I)   # time-major, flat

    kernel = _make_ann_kernel(T, Bp, HIDDEN_DIM)
    vmem_spec = lambda: pl.BlockSpec(memory_space=pltpu.MemorySpace.VMEM)
    out = pl.pallas_call(
        kernel,
        out_shape=jax.ShapeDtypeStruct((Bp, O), jnp.float32),
        in_specs=[vmem_spec() for _ in range(12)],
        out_specs=vmem_spec(),
        scratch_shapes=[pltpu.VMEM((T * Bp, GP), jnp.float32)],
    )(x_tm, kp["w0x"], kp["w0h"], kp["b0"],
      kp["w1i"], kp["w1r"], kp["b1"],
      kp["w2i"], kp["w2r"], kp["b2"],
      kp["fcw"], kp["fcb"])
    return out[:B]


# --------------------------------------------------------------------------
# Pure-JAX reference (logical, unpadded params)
# --------------------------------------------------------------------------
def ann_forward_ref(x, params, hidden=HIDDEN_DIM):
    B, T, _ = x.shape
    H = hidden

    def cell(x_t, h, c, w_ih, w_hh, b):
        g = x_t @ w_ih + h @ w_hh + b
        i = jax.nn.sigmoid(g[:, :H])
        f = jax.nn.sigmoid(g[:, H:2 * H])
        gg = jnp.tanh(g[:, 2 * H:3 * H])
        o = jax.nn.sigmoid(g[:, 3 * H:])
        c = f * c + i * gg
        h = o * jnp.tanh(c)
        return h, c

    hs = [jnp.zeros((B, H), jnp.float32) for _ in range(LAYER_DIM)]
    cs = [jnp.zeros((B, H), jnp.float32) for _ in range(LAYER_DIM)]
    for t in range(T):
        inp = x[:, t, :]
        for l in range(LAYER_DIM):
            hs[l], cs[l] = cell(inp, hs[l], cs[l],
                                params[f"w_ih{l}"], params[f"w_hh{l}"],
                                params[f"b{l}"])
            inp = hs[l]
    return hs[-1] @ params["fc_w"] + params["fc_b"]


if __name__ == "__main__":
    B, T, INPUTS, OUTPUTS = 2, 8, 4, 3

    key = jax.random.PRNGKey(0)
    kx, kp_key = jax.random.split(key)
    x = jax.random.normal(kx, (B, T, INPUTS), jnp.float32)
    params = init_params(kp_key, INPUTS, OUTPUTS)
    kparams = prepare_params(params)

    out = ann_forward(x, kparams)
    out = jax.block_until_ready(out)

    ref = ann_forward_ref(x, params)
    np.testing.assert_allclose(np.asarray(out), np.asarray(ref),
                               rtol=1e-4, atol=1e-4)
    print("KERNEL_OK")
</pallas_src>

<mosaic_0001>
module attributes {stable_mosaic.version = 11 : i64} {
  func.func @kernel(%arg0: memref<64x4xf32, #tpu.memory_space<vmem>>, %arg1: memref<4x128xf32, #tpu.memory_space<vmem>>, %arg2: memref<10x128xf32, #tpu.memory_space<vmem>>, %arg3: memref<1x128xf32, #tpu.memory_space<vmem>>, %arg4: memref<10x128xf32, #tpu.memory_space<vmem>>, %arg5: memref<10x128xf32, #tpu.memory_space<vmem>>, %arg6: memref<1x128xf32, #tpu.memory_space<vmem>>, %arg7: memref<10x128xf32, #tpu.memory_space<vmem>>, %arg8: memref<10x128xf32, #tpu.memory_space<vmem>>, %arg9: memref<1x128xf32, #tpu.memory_space<vmem>>, %arg10: memref<10x3xf32, #tpu.memory_space<vmem>>, %arg11: memref<1x3xf32, #tpu.memory_space<vmem>>, %arg12: memref<8x3xf32, #tpu.memory_space<vmem>>, %arg13: memref<64x128xf32, #tpu.memory_space<vmem>>) attributes {dimension_semantics = [], scalar_prefetch = 0 : i64, scratch_operands = 1 : i64, tpu.core_type = #tpu.core_type<tc>} {
    %c0 = arith.constant 0 : index
    %c0_0 = arith.constant 0 : index
    %0 = vector.load %arg0[%c0, %c0_0] : memref<64x4xf32, #tpu.memory_space<vmem>>, vector<64x4xf32>
    %c0_1 = arith.constant 0 : index
    %c0_2 = arith.constant 0 : index
    %1 = vector.load %arg1[%c0_1, %c0_2] : memref<4x128xf32, #tpu.memory_space<vmem>>, vector<4x128xf32>
    %cst = arith.constant dense<0.000000e+00> : vector<64x128xf32>
    %2 = tpu.matmul %0, %1, %cst {dimension_numbers = #tpu.dot_dimension_numbers<[1], [0], [0], [1], [0, 0, 1, 1], [], []>} : vector<64x4xf32>, vector<4x128xf32>, vector<64x128xf32> -> vector<64x128xf32>
    %c0_3 = arith.constant 0 : index
    %c0_4 = arith.constant 0 : index
    %3 = vector.load %arg3[%c0_3, %c0_4] : memref<1x128xf32, #tpu.memory_space<vmem>>, vector<1x128xf32>
    %4 = vector.broadcast %3 : vector<1x128xf32> to vector<64x128xf32>
    %5 = arith.addf %2, %4 : vector<64x128xf32>
    %c0_5 = arith.constant 0 : index
    %c0_6 = arith.constant 0 : index
    %6 = vector.load %arg13[%c0_5, %c0_6] : memref<64x128xf32, #tpu.memory_space<vmem>>, vector<64x128xf32>
    tpu.vector_store %arg13[%c0_5, %c0_6], %5 {strides = array<i32>} : memref<64x128xf32, #tpu.memory_space<vmem>>, vector<64x128xf32>,
    %7 = tpu.iota {dimensions = array<i32: 1>} : vector<8x128xi32>
    %c64_i32 = arith.constant 64 : i32
    %8 = vector.broadcast %c64_i32 : i32 to vector<8x128xi32>
    %9 = arith.cmpi sge, %7, %8 : vector<8x128xi32>
    %c96_i32 = arith.constant 96 : i32
    %10 = vector.broadcast %c96_i32 : i32 to vector<8x128xi32>
    %11 = arith.cmpi slt, %7, %10 : vector<8x128xi32>
    %12 = arith.andi %9, %11 : vector<8x128xi1>
    %cst_7 = arith.constant 1.000000e+00 : f32
    %cst_8 = arith.constant 5.000000e-01 : f32
    %13 = vector.broadcast %cst_7 : f32 to vector<8x128xf32>
    %14 = vector.broadcast %cst_8 : f32 to vector<8x128xf32>
    %15 = arith.select %12, %13, %14 : vector<8x128xi1>, vector<8x128xf32>
    %cst_9 = arith.constant 0.000000e+00 : f32
    %cst_10 = arith.constant 5.000000e-01 : f32
    %16 = vector.broadcast %cst_9 : f32 to vector<8x128xf32>
    %17 = vector.broadcast %cst_10 : f32 to vector<8x128xf32>
    %18 = arith.select %12, %16, %17 : vector<8x128xi1>, vector<8x128xf32>
    %c0_11 = arith.constant 0 : index
    %c0_12 = arith.constant 0 : index
    %19 = vector.load %arg6[%c0_11, %c0_12] : memref<1x128xf32, #tpu.memory_space<vmem>>, vector<1x128xf32>
    %20 = vector.shape_cast %19 : vector<1x128xf32> to vector<1x128xf32>
    %21 = vector.broadcast %20 : vector<1x128xf32> to vector<8x128xf32>
    %c0_13 = arith.constant 0 : index
    %c0_14 = arith.constant 0 : index
    %22 = vector.load %arg9[%c0_13, %c0_14] : memref<1x128xf32, #tpu.memory_space<vmem>>, vector<1x128xf32>
    %23 = vector.shape_cast %22 : vector<1x128xf32> to vector<1x128xf32>
    %24 = vector.broadcast %23 : vector<1x128xf32> to vector<8x128xf32>
    %cst_15 = arith.constant 0.000000e+00 : f32
    %25 = vector.broadcast %cst_15 : f32 to vector<8x10xf32>
    %c0_16 = arith.constant 0 : index
    %c0_17 = arith.constant 0 : index
    %26 = vector.load %arg13[%c0_16, %c0_17] : memref<64x128xf32, #tpu.memory_space<vmem>>, vector<8x128xf32>
    %c0_18 = arith.constant 0 : index
    %c0_19 = arith.constant 0 : index
    %27 = vector.load %arg2[%c0_18, %c0_19] : memref<10x128xf32, #tpu.memory_space<vmem>>, vector<10x128xf32>
    %cst_20 = arith.constant dense<0.000000e+00> : vector<8x128xf32>
    %28 = tpu.matmul %25, %27, %cst_20 {dimension_numbers = #tpu.dot_dimension_numbers<[1], [0], [0], [1], [0, 0, 1, 1], [], []>} : vector<8x10xf32>, vector<10x128xf32>, vector<8x128xf32> -> vector<8x128xf32>
    %29 = arith.addf %26, %28 : vector<8x128xf32>
    %30 = math.tanh %29 : vector<8x128xf32>
    %31 = arith.mulf %30, %15 : vector<8x128xf32>
    %32 = arith.addf %31, %18 : vector<8x128xf32>
    %33 = vector.extract_strided_slice %32 {offsets = [0, 0], sizes = [8, 10], strides = [1, 1]} : vector<8x128xf32> to vector<8x10xf32>
    %34 = vector.extract_strided_slice %32 {offsets = [0, 32], sizes = [8, 10], strides = [1, 1]} : vector<8x128xf32> to vector<8x10xf32>
    %35 = vector.extract_strided_slice %32 {offsets = [0, 64], sizes = [8, 10], strides = [1, 1]} : vector<8x128xf32> to vector<8x10xf32>
    %36 = vector.extract_strided_slice %32 {offsets = [0, 96], sizes = [8, 10], strides = [1, 1]} : vector<8x128xf32> to vector<8x10xf32>
    %37 = arith.mulf %34, %25 : vector<8x10xf32>
    %38 = arith.mulf %33, %35 : vector<8x10xf32>
    %39 = arith.addf %37, %38 : vector<8x10xf32>
    %40 = math.tanh %39 : vector<8x10xf32>
    %41 = arith.mulf %36, %40 : vector<8x10xf32>
    %c0_21 = arith.constant 0 : index
    %c0_22 = arith.constant 0 : index
    %42 = vector.load %arg4[%c0_21, %c0_22] : memref<10x128xf32, #tpu.memory_space<vmem>>, vector<10x128xf32>
    %cst_23 = arith.constant dense<0.000000e+00> : vector<8x128xf32>
    %43 = tpu.matmul %41, %42, %cst_23 {dimension_numbers = #tpu.dot_dimension_numbers<[1], [0], [0], [1], [0, 0, 1, 1], [], []>} : vector<8x10xf32>, vector<10x128xf32>, vector<8x128xf32> -> vector<8x128xf32>
    %c0_24 = arith.constant 0 : index
    %c0_25 = arith.constant 0 : index
    %44 = vector.load %arg5[%c0_24, %c0_25] : memref<10x128xf32, #tpu.memory_space<vmem>>, vector<10x128xf32>
    %cst_26 = arith.constant dense<0.000000e+00> : vector<8x128xf32>
    %45 = tpu.matmul %25, %44, %cst_26 {dimension_numbers = #tpu.dot_dimension_numbers<[1], [0], [0], [1], [0, 0, 1, 1], [], []>} : vector<8x10xf32>, vector<10x128xf32>, vector<8x128xf32> -> vector<8x128xf32>
    %46 = arith.addf %43, %45 : vector<8x128xf32>
    %47 = arith.addf %46, %21 : vector<8x128xf32>
    %48 = math.tanh %47 : vector<8x128xf32>
    %49 = arith.mulf %48, %15 : vector<8x128xf32>
    %50 = arith.addf %49, %18 : vector<8x128xf32>
    %51 = vector.extract_strided_slice %50 {offsets = [0, 0], sizes = [8, 10], strides = [1, 1]} : vector<8x128xf32> to vector<8x10xf32>
    %52 = vector.extract_strided_slice %50 {offsets = [0, 32], sizes = [8, 10], strides = [1, 1]} : vector<8x128xf32> to vector<8x10xf32>
    %53 = vector.extract_strided_slice %50 {offsets = [0, 64], sizes = [8, 10], strides = [1, 1]} : vector<8x128xf32> to vector<8x10xf32>
    %54 = vector.extract_strided_slice %50 {offsets = [0, 96], sizes = [8, 10], strides = [1, 1]} : vector<8x128xf32> to vector<8x10xf32>
    %55 = arith.mulf %52, %25 : vector<8x10xf32>
    %56 = arith.mulf %51, %53 : vector<8x10xf32>
    %57 = arith.addf %55, %56 : vector<8x10xf32>
    %58 = math.tanh %57 : vector<8x10xf32>
    %59 = arith.mulf %54, %58 : vector<8x10xf32>
    %c0_27 = arith.constant 0 : index
    %c0_28 = arith.constant 0 : index
    %60 = vector.load %arg7[%c0_27, %c0_28] : memref<10x128xf32, #tpu.memory_space<vmem>>, vector<10x128xf32>
    %cst_29 = arith.constant dense<0.000000e+00> : vector<8x128xf32>
    %61 = tpu.matmul %59, %60, %cst_29 {dimension_numbers = #tpu.dot_dimension_numbers<[1], [0], [0], [1], [0, 0, 1, 1], [], []>} : vector<8x10xf32>, vector<10x128xf32>, vector<8x128xf32> -> vector<8x128xf32>
    %c0_30 = arith.constant 0 : index
    %c0_31 = arith.constant 0 : index
    %62 = vector.load %arg8[%c0_30, %c0_31] : memref<10x128xf32, #tpu.memory_space<vmem>>, vector<10x128xf32>
    %cst_32 = arith.constant dense<0.000000e+00> : vector<8x128xf32>
    %63 = tpu.matmul %25, %62, %cst_32 {dimension_numbers = #tpu.dot_dimension_numbers<[1], [0], [0], [1], [0, 0, 1, 1], [], []>} : vector<8x10xf32>, vector<10x128xf32>, vector<8x128xf32> -> vector<8x128xf32>
    %64 = arith.addf %61, %63 : vector<8x128xf32>
    %65 = arith.addf %64, %24 : vector<8x128xf32>
    %66 = math.tanh %65 : vector<8x128xf32>
    %67 = arith.mulf %66, %15 : vector<8x128xf32>
    %68 = arith.addf %67, %18 : vector<8x128xf32>
    %69 = vector.extract_strided_slice %68 {offsets = [0, 0], sizes = [8, 10], strides = [1, 1]} : vector<8x128xf32> to vector<8x10xf32>
    %70 = vector.extract_strided_slice %68 {offsets = [0, 32], sizes = [8, 10], strides = [1, 1]} : vector<8x128xf32> to vector<8x10xf32>
    %71 = vector.extract_strided_slice %68 {offsets = [0, 64], sizes = [8, 10], strides = [1, 1]} : vector<8x128xf32> to vector<8x10xf32>
    %72 = vector.extract_strided_slice %68 {offsets = [0, 96], sizes = [8, 10], strides = [1, 1]} : vector<8x128xf32> to vector<8x10xf32>
    %73 = arith.mulf %70, %25 : vector<8x10xf32>
    %74 = arith.mulf %69, %71 : vector<8x10xf32>
    %75 = arith.addf %73, %74 : vector<8x10xf32>
    %76 = math.tanh %75 : vector<8x10xf32>
    %77 = arith.mulf %72, %76 : vector<8x10xf32>
    %c8 = arith.constant 8 : index
    %c0_33 = arith.constant 0 : index
    %78 = vector.load %arg13[%c8, %c0_33] : memref<64x128xf32, #tpu.memory_space<vmem>>, vector<8x128xf32>
    %c0_34 = arith.constant 0 : index
    %c0_35 = arith.constant 0 : index
    %79 = vector.load %arg2[%c0_34, %c0_35] : memref<10x128xf32, #tpu.memory_space<vmem>>, vector<10x128xf32>
    %cst_36 = arith.constant dense<0.000000e+00> : vector<8x128xf32>
    %80 = tpu.matmul %41, %79, %cst_36 {dimension_numbers = #tpu.dot_dimension_numbers<[1], [0], [0], [1], [0, 0, 1, 1], [], []>} : vector<8x10xf32>, vector<10x128xf32>, vector<8x128xf32> -> vector<8x128xf32>
    %81 = arith.addf %78, %80 : vector<8x128xf32>
    %82 = math.tanh %81 : vector<8x128xf32>
    %83 = arith.mulf %82, %15 : vector<8x128xf32>
    %84 = arith.addf %83, %18 : vector<8x128xf32>
    %85 = vector.extract_strided_slice %84 {offsets = [0, 0], sizes = [8, 10], strides = [1, 1]} : vector<8x128xf32> to vector<8x10xf32>
    %86 = vector.extract_strided_slice %84 {offsets = [0, 32], sizes = [8, 10], strides = [1, 1]} : vector<8x128xf32> to vector<8x10xf32>
    %87 = vector.extract_strided_slice %84 {offsets = [0, 64], sizes = [8, 10], strides = [1, 1]} : vector<8x128xf32> to vector<8x10xf32>
    %88 = vector.extract_strided_slice %84 {offsets = [0, 96], sizes = [8, 10], strides = [1, 1]} : vector<8x128xf32> to vector<8x10xf32>
    %89 = arith.mulf %86, %39 : vector<8x10xf32>
    %90 = arith.mulf %85, %87 : vector<8x10xf32>
    %91 = arith.addf %89, %90 : vector<8x10xf32>
    %92 = math.tanh %91 : vector<8x10xf32>
    %93 = arith.mulf %88, %92 : vector<8x10xf32>
    %c0_37 = arith.constant 0 : index
    %c0_38 = arith.constant 0 : index
    %94 = vector.load %arg4[%c0_37, %c0_38] : memref<10x128xf32, #tpu.memory_space<vmem>>, vector<10x128xf32>
    %cst_39 = arith.constant dense<0.000000e+00> : vector<8x128xf32>
    %95 = tpu.matmul %93, %94, %cst_39 {dimension_numbers = #tpu.dot_dimension_numbers<[1], [0], [0], [1], [0, 0, 1, 1], [], []>} : vector<8x10xf32>, vector<10x128xf32>, vector<8x128xf32> -> vector<8x128xf32>
    %c0_40 = arith.constant 0 : index
    %c0_41 = arith.constant 0 : index
    %96 = vector.load %arg5[%c0_40, %c0_41] : memref<10x128xf32, #tpu.memory_space<vmem>>, vector<10x128xf32>
    %cst_42 = arith.constant dense<0.000000e+00> : vector<8x128xf32>
    %97 = tpu.matmul %59, %96, %cst_42 {dimension_numbers = #tpu.dot_dimension_numbers<[1], [0], [0], [1], [0, 0, 1, 1], [], []>} : vector<8x10xf32>, vector<10x128xf32>, vector<8x128xf32> -> vector<8x128xf32>
    %98 = arith.addf %95, %97 : vector<8x128xf32>
    %99 = arith.addf %98, %21 : vector<8x128xf32>
    %100 = math.tanh %99 : vector<8x128xf32>
    %101 = arith.mulf %100, %15 : vector<8x128xf32>
    %102 = arith.addf %101, %18 : vector<8x128xf32>
    %103 = vector.extract_strided_slice %102 {offsets = [0, 0], sizes = [8, 10], strides = [1, 1]} : vector<8x128xf32> to vector<8x10xf32>
    %104 = vector.extract_strided_slice %102 {offsets = [0, 32], sizes = [8, 10], strides = [1, 1]} : vector<8x128xf32> to vector<8x10xf32>
    %105 = vector.extract_strided_slice %102 {offsets = [0, 64], sizes = [8, 10], strides = [1, 1]} : vector<8x128xf32> to vector<8x10xf32>
    %106 = vector.extract_strided_slice %102 {offsets = [0, 96], sizes = [8, 10], strides = [1, 1]} : vector<8x128xf32> to vector<8x10xf32>
    %107 = arith.mulf %104, %57 : vector<8x10xf32>
    %108 = arith.mulf %103, %105 : vector<8x10xf32>
    %109 = arith.addf %107, %108 : vector<8x10xf32>
    %110 = math.tanh %109 : vector<8x10xf32>
    %111 = arith.mulf %106, %110 : vector<8x10xf32>
    %c0_43 = arith.constant 0 : index
    %c0_44 = arith.constant 0 : index
    %112 = vector.load %arg7[%c0_43, %c0_44] : memref<10x128xf32, #tpu.memory_space<vmem>>, vector<10x128xf32>
    %cst_45 = arith.constant dense<0.000000e+00> : vector<8x128xf32>
    %113 = tpu.matmul %111, %112, %cst_45 {dimension_numbers = #tpu.dot_dimension_numbers<[1], [0], [0], [1], [0, 0, 1, 1], [], []>} : vector<8x10xf32>, vector<10x128xf32>, vector<8x128xf32> -> vector<8x128xf32>
    %c0_46 = arith.constant 0 : index
    %c0_47 = arith.constant 0 : index
    %114 = vector.load %arg8[%c0_46, %c0_47] : memref<10x128xf32, #tpu.memory_space<vmem>>, vector<10x128xf32>
    %cst_48 = arith.constant dense<0.000000e+00> : vector<8x128xf32>
    %115 = tpu.matmul %77, %114, %cst_48 {dimension_numbers = #tpu.dot_dimension_numbers<[1], [0], [0], [1], [0, 0, 1, 1], [], []>} : vector<8x10xf32>, vector<10x128xf32>, vector<8x128xf32> -> vector<8x128xf32>
    %116 = arith.addf %113, %115 : vector<8x128xf32>
    %117 = arith.addf %116, %24 : vector<8x128xf32>
    %118 = math.tanh %117 : vector<8x128xf32>
    %119 = arith.mulf %118, %15 : vector<8x128xf32>
    %120 = arith.addf %119, %18 : vector<8x128xf32>
    %121 = vector.extract_strided_slice %120 {offsets = [0, 0], sizes = [8, 10], strides = [1, 1]} : vector<8x128xf32> to vector<8x10xf32>
    %122 = vector.extract_strided_slice %120 {offsets = [0, 32], sizes = [8, 10], strides = [1, 1]} : vector<8x128xf32> to vector<8x10xf32>
    %123 = vector.extract_strided_slice %120 {offsets = [0, 64], sizes = [8, 10], strides = [1, 1]} : vector<8x128xf32> to vector<8x10xf32>
    %124 = vector.extract_strided_slice %120 {offsets = [0, 96], sizes = [8, 10], strides = [1, 1]} : vector<8x128xf32> to vector<8x10xf32>
    %125 = arith.mulf %122, %75 : vector<8x10xf32>
    %126 = arith.mulf %121, %123 : vector<8x10xf32>
    %127 = arith.addf %125, %126 : vector<8x10xf32>
    %128 = math.tanh %127 : vector<8x10xf32>
    %129 = arith.mulf %124, %128 : vector<8x10xf32>
    %c16 = arith.constant 16 : index
    %c0_49 = arith.constant 0 : index
    %130 = vector.load %arg13[%c16, %c0_49] : memref<64x128xf32, #tpu.memory_space<vmem>>, vector<8x128xf32>
    %c0_50 = arith.constant 0 : index
    %c0_51 = arith.constant 0 : index
    %131 = vector.load %arg2[%c0_50, %c0_51] : memref<10x128xf32, #tpu.memory_space<vmem>>, vector<10x128xf32>
    %cst_52 = arith.constant dense<0.000000e+00> : vector<8x128xf32>
    %132 = tpu.matmul %93, %131, %cst_52 {dimension_numbers = #tpu.dot_dimension_numbers<[1], [0], [0], [1], [0, 0, 1, 1], [], []>} : vector<8x10xf32>, vector<10x128xf32>, vector<8x128xf32> -> vector<8x128xf32>
    %133 = arith.addf %130, %132 : vector<8x128xf32>
    %134 = math.tanh %133 : vector<8x128xf32>
    %135 = arith.mulf %134, %15 : vector<8x128xf32>
    %136 = arith.addf %135, %18 : vector<8x128xf32>
    %137 = vector.extract_strided_slice %136 {offsets = [0, 0], sizes = [8, 10], strides = [1, 1]} : vector<8x128xf32> to vector<8x10xf32>
    %138 = vector.extract_strided_slice %136 {offsets = [0, 32], sizes = [8, 10], strides = [1, 1]} : vector<8x128xf32> to vector<8x10xf32>
    %139 = vector.extract_strided_slice %136 {offsets = [0, 64], sizes = [8, 10], strides = [1, 1]} : vector<8x128xf32> to vector<8x10xf32>
    %140 = vector.extract_strided_slice %136 {offsets = [0, 96], sizes = [8, 10], strides = [1, 1]} : vector<8x128xf32> to vector<8x10xf32>
    %141 = arith.mulf %138, %91 : vector<8x10xf32>
    %142 = arith.mulf %137, %139 : vector<8x10xf32>
    %143 = arith.addf %141, %142 : vector<8x10xf32>
    %144 = math.tanh %143 : vector<8x10xf32>
    %145 = arith.mulf %140, %144 : vector<8x10xf32>
    %c0_53 = arith.constant 0 : index
    %c0_54 = arith.constant 0 : index
    %146 = vector.load %arg4[%c0_53, %c0_54] : memref<10x128xf32, #tpu.memory_space<vmem>>, vector<10x128xf32>
    %cst_55 = arith.constant dense<0.000000e+00> : vector<8x128xf32>
    %147 = tpu.matmul %145, %146, %cst_55 {dimension_numbers = #tpu.dot_dimension_numbers<[1], [0], [0], [1], [0, 0, 1, 1], [], []>} : vector<8x10xf32>, vector<10x128xf32>, vector<8x128xf32> -> vector<8x128xf32>
    %c0_56 = arith.constant 0 : index
    %c0_57 = arith.constant 0 : index
    %148 = vector.load %arg5[%c0_56, %c0_57] : memref<10x128xf32, #tpu.memory_space<vmem>>, vector<10x128xf32>
    %cst_58 = arith.constant dense<0.000000e+00> : vector<8x128xf32>
    %149 = tpu.matmul %111, %148, %cst_58 {dimension_numbers = #tpu.dot_dimension_numbers<[1], [0], [0], [1], [0, 0, 1, 1], [], []>} : vector<8x10xf32>, vector<10x128xf32>, vector<8x128xf32> -> vector<8x128xf32>
    %150 = arith.addf %147, %149 : vector<8x128xf32>
    %151 = arith.addf %150, %21 : vector<8x128xf32>
    %152 = math.tanh %151 : vector<8x128xf32>
    %153 = arith.mulf %152, %15 : vector<8x128xf32>
    %154 = arith.addf %153, %18 : vector<8x128xf32>
    %155 = vector.extract_strided_slice %154 {offsets = [0, 0], sizes = [8, 10], strides = [1, 1]} : vector<8x128xf32> to vector<8x10xf32>
    %156 = vector.extract_strided_slice %154 {offsets = [0, 32], sizes = [8, 10], strides = [1, 1]} : vector<8x128xf32> to vector<8x10xf32>
    %157 = vector.extract_strided_slice %154 {offsets = [0, 64], sizes = [8, 10], strides = [1, 1]} : vector<8x128xf32> to vector<8x10xf32>
    %158 = vector.extract_strided_slice %154 {offsets = [0, 96], sizes = [8, 10], strides = [1, 1]} : vector<8x128xf32> to vector<8x10xf32>
    %159 = arith.mulf %156, %109 : vector<8x10xf32>
    %160 = arith.mulf %155, %157 : vector<8x10xf32>
    %161 = arith.addf %159, %160 : vector<8x10xf32>
    %162 = math.tanh %161 : vector<8x10xf32>
    %163 = arith.mulf %158, %162 : vector<8x10xf32>
    %c0_59 = arith.constant 0 : index
    %c0_60 = arith.constant 0 : index
    %164 = vector.load %arg7[%c0_59, %c0_60] : memref<10x128xf32, #tpu.memory_space<vmem>>, vector<10x128xf32>
    %cst_61 = arith.constant dense<0.000000e+00> : vector<8x128xf32>
    %165 = tpu.matmul %163, %164, %cst_61 {dimension_numbers = #tpu.dot_dimension_numbers<[1], [0], [0], [1], [0, 0, 1, 1], [], []>} : vector<8x10xf32>, vector<10x128xf32>, vector<8x128xf32> -> vector<8x128xf32>
    %c0_62 = arith.constant 0 : index
    %c0_63 = arith.constant 0 : index
    %166 = vector.load %arg8[%c0_62, %c0_63] : memref<10x128xf32, #tpu.memory_space<vmem>>, vector<10x128xf32>
    %cst_64 = arith.constant dense<0.000000e+00> : vector<8x128xf32>
    %167 = tpu.matmul %129, %166, %cst_64 {dimension_numbers = #tpu.dot_dimension_numbers<[1], [0], [0], [1], [0, 0, 1, 1], [], []>} : vector<8x10xf32>, vector<10x128xf32>, vector<8x128xf32> -> vector<8x128xf32>
    %168 = arith.addf %165, %167 : vector<8x128xf32>
    %169 = arith.addf %168, %24 : vector<8x128xf32>
    %170 = math.tanh %169 : vector<8x128xf32>
    %171 = arith.mulf %170, %15 : vector<8x128xf32>
    %172 = arith.addf %171, %18 : vector<8x128xf32>
    %173 = vector.extract_strided_slice %172 {offsets = [0, 0], sizes = [8, 10], strides = [1, 1]} : vector<8x128xf32> to vector<8x10xf32>
    %174 = vector.extract_strided_slice %172 {offsets = [0, 32], sizes = [8, 10], strides = [1, 1]} : vector<8x128xf32> to vector<8x10xf32>
    %175 = vector.extract_strided_slice %172 {offsets = [0, 64], sizes = [8, 10], strides = [1, 1]} : vector<8x128xf32> to vector<8x10xf32>
    %176 = vector.extract_strided_slice %172 {offsets = [0, 96], sizes = [8, 10], strides = [1, 1]} : vector<8x128xf32> to vector<8x10xf32>
    %177 = arith.mulf %174, %127 : vector<8x10xf32>
    %178 = arith.mulf %173, %175 : vector<8x10xf32>
    %179 = arith.addf %177, %178 : vector<8x10xf32>
    %180 = math.tanh %179 : vector<8x10xf32>
    %181 = arith.mulf %176, %180 : vector<8x10xf32>
    %c24 = arith.constant 24 : index
    %c0_65 = arith.constant 0 : index
    %182 = vector.load %arg13[%c24, %c0_65] : memref<64x128xf32, #tpu.memory_space<vmem>>, vector<8x128xf32>
    %c0_66 = arith.constant 0 : index
    %c0_67 = arith.constant 0 : index
    %183 = vector.load %arg2[%c0_66, %c0_67] : memref<10x128xf32, #tpu.memory_space<vmem>>, vector<10x128xf32>
    %cst_68 = arith.constant dense<0.000000e+00> : vector<8x128xf32>
    %184 = tpu.matmul %145, %183, %cst_68 {dimension_numbers = #tpu.dot_dimension_numbers<[1], [0], [0], [1], [0, 0, 1, 1], [], []>} : vector<8x10xf32>, vector<10x128xf32>, vector<8x128xf32> -> vector<8x128xf32>
    %185 = arith.addf %182, %184 : vector<8x128xf32>
    %186 = math.tanh %185 : vector<8x128xf32>
    %187 = arith.mulf %186, %15 : vector<8x128xf32>
    %188 = arith.addf %187, %18 : vector<8x128xf32>
    %189 = vector.extract_strided_slice %188 {offsets = [0, 0], sizes = [8, 10], strides = [1, 1]} : vector<8x128xf32> to vector<8x10xf32>
    %190 = vector.extract_strided_slice %188 {offsets = [0, 32], sizes = [8, 10], strides = [1, 1]} : vector<8x128xf32> to vector<8x10xf32>
    %191 = vector.extract_strided_slice %188 {offsets = [0, 64], sizes = [8, 10], strides = [1, 1]} : vector<8x128xf32> to vector<8x10xf32>
    %192 = vector.extract_strided_slice %188 {offsets = [0, 96], sizes = [8, 10], strides = [1, 1]} : vector<8x128xf32> to vector<8x10xf32>
    %193 = arith.mulf %190, %143 : vector<8x10xf32>
    %194 = arith.mulf %189, %191 : vector<8x10xf32>
    %195 = arith.addf %193, %194 : vector<8x10xf32>
    %196 = math.tanh %195 : vector<8x10xf32>
    %197 = arith.mulf %192, %196 : vector<8x10xf32>
    %c0_69 = arith.constant 0 : index
    %c0_70 = arith.constant 0 : index
    %198 = vector.load %arg4[%c0_69, %c0_70] : memref<10x128xf32, #tpu.memory_space<vmem>>, vector<10x128xf32>
    %cst_71 = arith.constant dense<0.000000e+00> : vector<8x128xf32>
    %199 = tpu.matmul %197, %198, %cst_71 {dimension_numbers = #tpu.dot_dimension_numbers<[1], [0], [0], [1], [0, 0, 1, 1], [], []>} : vector<8x10xf32>, vector<10x128xf32>, vector<8x128xf32> -> vector<8x128xf32>
    %c0_72 = arith.constant 0 : index
    %c0_73 = arith.constant 0 : index
    %200 = vector.load %arg5[%c0_72, %c0_73] : memref<10x128xf32, #tpu.memory_space<vmem>>, vector<10x128xf32>
    %cst_74 = arith.constant dense<0.000000e+00> : vector<8x128xf32>
    %201 = tpu.matmul %163, %200, %cst_74 {dimension_numbers = #tpu.dot_dimension_numbers<[1], [0], [0], [1], [0, 0, 1, 1], [], []>} : vector<8x10xf32>, vector<10x128xf32>, vector<8x128xf32> -> vector<8x128xf32>
    %202 = arith.addf %199, %201 : vector<8x128xf32>
    %203 = arith.addf %202, %21 : vector<8x128xf32>
    %204 = math.tanh %203 : vector<8x128xf32>
    %205 = arith.mulf %204, %15 : vector<8x128xf32>
    %206 = arith.addf %205, %18 : vector<8x128xf32>
    %207 = vector.extract_strided_slice %206 {offsets = [0, 0], sizes = [8, 10], strides = [1, 1]} : vector<8x128xf32> to vector<8x10xf32>
    %208 = vector.extract_strided_slice %206 {offsets = [0, 32], sizes = [8, 10], strides = [1, 1]} : vector<8x128xf32> to vector<8x10xf32>
    %209 = vector.extract_strided_slice %206 {offsets = [0, 64], sizes = [8, 10], strides = [1, 1]} : vector<8x128xf32> to vector<8x10xf32>
    %210 = vector.extract_strided_slice %206 {offsets = [0, 96], sizes = [8, 10], strides = [1, 1]} : vector<8x128xf32> to vector<8x10xf32>
    %211 = arith.mulf %208, %161 : vector<8x10xf32>
    %212 = arith.mulf %207, %209 : vector<8x10xf32>
    %213 = arith.addf %211, %212 : vector<8x10xf32>
    %214 = math.tanh %213 : vector<8x10xf32>
    %215 = arith.mulf %210, %214 : vector<8x10xf32>
    %c0_75 = arith.constant 0 : index
    %c0_76 = arith.constant 0 : index
    %216 = vector.load %arg7[%c0_75, %c0_76] : memref<10x128xf32, #tpu.memory_space<vmem>>, vector<10x128xf32>
    %cst_77 = arith.constant dense<0.000000e+00> : vector<8x128xf32>
    %217 = tpu.matmul %215, %216, %cst_77 {dimension_numbers = #tpu.dot_dimension_numbers<[1], [0], [0], [1], [0, 0, 1, 1], [], []>} : vector<8x10xf32>, vector<10x128xf32>, vector<8x128xf32> -> vector<8x128xf32>
    %c0_78 = arith.constant 0 : index
    %c0_79 = arith.constant 0 : index
    %218 = vector.load %arg8[%c0_78, %c0_79] : memref<10x128xf32, #tpu.memory_space<vmem>>, vector<10x128xf32>
    %cst_80 = arith.constant dense<0.000000e+00> : vector<8x128xf32>
    %219 = tpu.matmul %181, %218, %cst_80 {dimension_numbers = #tpu.dot_dimension_numbers<[1], [0], [0], [1], [0, 0, 1, 1], [], []>} : vector<8x10xf32>, vector<10x128xf32>, vector<8x128xf32> -> vector<8x128xf32>
    %220 = arith.addf %217, %219 : vector<8x128xf32>
    %221 = arith.addf %220, %24 : vector<8x128xf32>
    %222 = math.tanh %221 : vector<8x128xf32>
    %223 = arith.mulf %222, %15 : vector<8x128xf32>
    %224 = arith.addf %223, %18 : vector<8x128xf32>
    %225 = vector.extract_strided_slice %224 {offsets = [0, 0], sizes = [8, 10], strides = [1, 1]} : vector<8x128xf32> to vector<8x10xf32>
    %226 = vector.extract_strided_slice %224 {offsets = [0, 32], sizes = [8, 10], strides = [1, 1]} : vector<8x128xf32> to vector<8x10xf32>
    %227 = vector.extract_strided_slice %224 {offsets = [0, 64], sizes = [8, 10], strides = [1, 1]} : vector<8x128xf32> to vector<8x10xf32>
    %228 = vector.extract_strided_slice %224 {offsets = [0, 96], sizes = [8, 10], strides = [1, 1]} : vector<8x128xf32> to vector<8x10xf32>
    %229 = arith.mulf %226, %179 : vector<8x10xf32>
    %230 = arith.mulf %225, %227 : vector<8x10xf32>
    %231 = arith.addf %229, %230 : vector<8x10xf32>
    %232 = math.tanh %231 : vector<8x10xf32>
    %233 = arith.mulf %228, %232 : vector<8x10xf32>
    %c32 = arith.constant 32 : index
    %c0_81 = arith.constant 0 : index
    %234 = vector.load %arg13[%c32, %c0_81] : memref<64x128xf32, #tpu.memory_space<vmem>>, vector<8x128xf32>
    %c0_82 = arith.constant 0 : index
    %c0_83 = arith.constant 0 : index
    %235 = vector.load %arg2[%c0_82, %c0_83] : memref<10x128xf32, #tpu.memory_space<vmem>>, vector<10x128xf32>
    %cst_84 = arith.constant dense<0.000000e+00> : vector<8x128xf32>
    %236 = tpu.matmul %197, %235, %cst_84 {dimension_numbers = #tpu.dot_dimension_numbers<[1], [0], [0], [1], [0, 0, 1, 1], [], []>} : vector<8x10xf32>, vector<10x128xf32>, vector<8x128xf32> -> vector<8x128xf32>
    %237 = arith.addf %234, %236 : vector<8x128xf32>
    %238 = math.tanh %237 : vector<8x128xf32>
    %239 = arith.mulf %238, %15 : vector<8x128xf32>
    %240 = arith.addf %239, %18 : vector<8x128xf32>
    %241 = vector.extract_strided_slice %240 {offsets = [0, 0], sizes = [8, 10], strides = [1, 1]} : vector<8x128xf32> to vector<8x10xf32>
    %242 = vector.extract_strided_slice %240 {offsets = [0, 32], sizes = [8, 10], strides = [1, 1]} : vector<8x128xf32> to vector<8x10xf32>
    %243 = vector.extract_strided_slice %240 {offsets = [0, 64], sizes = [8, 10], strides = [1, 1]} : vector<8x128xf32> to vector<8x10xf32>
    %244 = vector.extract_strided_slice %240 {offsets = [0, 96], sizes = [8, 10], strides = [1, 1]} : vector<8x128xf32> to vector<8x10xf32>
    %245 = arith.mulf %242, %195 : vector<8x10xf32>
    %246 = arith.mulf %241, %243 : vector<8x10xf32>
    %247 = arith.addf %245, %246 : vector<8x10xf32>
    %248 = math.tanh %247 : vector<8x10xf32>
    %249 = arith.mulf %244, %248 : vector<8x10xf32>
    %c0_85 = arith.constant 0 : index
    %c0_86 = arith.constant 0 : index
    %250 = vector.load %arg4[%c0_85, %c0_86] : memref<10x128xf32, #tpu.memory_space<vmem>>, vector<10x128xf32>
    %cst_87 = arith.constant dense<0.000000e+00> : vector<8x128xf32>
    %251 = tpu.matmul %249, %250, %cst_87 {dimension_numbers = #tpu.dot_dimension_numbers<[1], [0], [0], [1], [0, 0, 1, 1], [], []>} : vector<8x10xf32>, vector<10x128xf32>, vector<8x128xf32> -> vector<8x128xf32>
    %c0_88 = arith.constant 0 : index
    %c0_89 = arith.constant 0 : index
    %252 = vector.load %arg5[%c0_88, %c0_89] : memref<10x128xf32, #tpu.memory_space<vmem>>, vector<10x128xf32>
    %cst_90 = arith.constant dense<0.000000e+00> : vector<8x128xf32>
    %253 = tpu.matmul %215, %252, %cst_90 {dimension_numbers = #tpu.dot_dimension_numbers<[1], [0], [0], [1], [0, 0, 1, 1], [], []>} : vector<8x10xf32>, vector<10x128xf32>, vector<8x128xf32> -> vector<8x128xf32>
    %254 = arith.addf %251, %253 : vector<8x128xf32>
    %255 = arith.addf %254, %21 : vector<8x128xf32>
    %256 = math.tanh %255 : vector<8x128xf32>
    %257 = arith.mulf %256, %15 : vector<8x128xf32>
    %258 = arith.addf %257, %18 : vector<8x128xf32>
    %259 = vector.extract_strided_slice %258 {offsets = [0, 0], sizes = [8, 10], strides = [1, 1]} : vector<8x128xf32> to vector<8x10xf32>
    %260 = vector.extract_strided_slice %258 {offsets = [0, 32], sizes = [8, 10], strides = [1, 1]} : vector<8x128xf32> to vector<8x10xf32>
    %261 = vector.extract_strided_slice %258 {offsets = [0, 64], sizes = [8, 10], strides = [1, 1]} : vector<8x128xf32> to vector<8x10xf32>
    %262 = vector.extract_strided_slice %258 {offsets = [0, 96], sizes = [8, 10], strides = [1, 1]} : vector<8x128xf32> to vector<8x10xf32>
    %263 = arith.mulf %260, %213 : vector<8x10xf32>
    %264 = arith.mulf %259, %261 : vector<8x10xf32>
    %265 = arith.addf %263, %264 : vector<8x10xf32>
    %266 = math.tanh %265 : vector<8x10xf32>
    %267 = arith.mulf %262, %266 : vector<8x10xf32>
    %c0_91 = arith.constant 0 : index
    %c0_92 = arith.constant 0 : index
    %268 = vector.load %arg7[%c0_91, %c0_92] : memref<10x128xf32, #tpu.memory_space<vmem>>, vector<10x128xf32>
    %cst_93 = arith.constant dense<0.000000e+00> : vector<8x128xf32>
    %269 = tpu.matmul %267, %268, %cst_93 {dimension_numbers = #tpu.dot_dimension_numbers<[1], [0], [0], [1], [0, 0, 1, 1], [], []>} : vector<8x10xf32>, vector<10x128xf32>, vector<8x128xf32> -> vector<8x128xf32>
    %c0_94 = arith.constant 0 : index
    %c0_95 = arith.constant 0 : index
    %270 = vector.load %arg8[%c0_94, %c0_95] : memref<10x128xf32, #tpu.memory_space<vmem>>, vector<10x128xf32>
    %cst_96 = arith.constant dense<0.000000e+00> : vector<8x128xf32>
    %271 = tpu.matmul %233, %270, %cst_96 {dimension_numbers = #tpu.dot_dimension_numbers<[1], [0], [0], [1], [0, 0, 1, 1], [], []>} : vector<8x10xf32>, vector<10x128xf32>, vector<8x128xf32> -> vector<8x128xf32>
    %272 = arith.addf %269, %271 : vector<8x128xf32>
    %273 = arith.addf %272, %24 : vector<8x128xf32>
    %274 = math.tanh %273 : vector<8x128xf32>
    %275 = arith.mulf %274, %15 : vector<8x128xf32>
    %276 = arith.addf %275, %18 : vector<8x128xf32>
    %277 = vector.extract_strided_slice %276 {offsets = [0, 0], sizes = [8, 10], strides = [1, 1]} : vector<8x128xf32> to vector<8x10xf32>
    %278 = vector.extract_strided_slice %276 {offsets = [0, 32], sizes = [8, 10], strides = [1, 1]} : vector<8x128xf32> to vector<8x10xf32>
    %279 = vector.extract_strided_slice %276 {offsets = [0, 64], sizes = [8, 10], strides = [1, 1]} : vector<8x128xf32> to vector<8x10xf32>
    %280 = vector.extract_strided_slice %276 {offsets = [0, 96], sizes = [8, 10], strides = [1, 1]} : vector<8x128xf32> to vector<8x10xf32>
    %281 = arith.mulf %278, %231 : vector<8x10xf32>
    %282 = arith.mulf %277, %279 : vector<8x10xf32>
    %283 = arith.addf %281, %282 : vector<8x10xf32>
    %284 = math.tanh %283 : vector<8x10xf32>
    %285 = arith.mulf %280, %284 : vector<8x10xf32>
    %c40 = arith.constant 40 : index
    %c0_97 = arith.constant 0 : index
    %286 = vector.load %arg13[%c40, %c0_97] : memref<64x128xf32, #tpu.memory_space<vmem>>, vector<8x128xf32>
    %c0_98 = arith.constant 0 : index
    %c0_99 = arith.constant 0 : index
    %287 = vector.load %arg2[%c0_98, %c0_99] : memref<10x128xf32, #tpu.memory_space<vmem>>, vector<10x128xf32>
    %cst_100 = arith.constant dense<0.000000e+00> : vector<8x128xf32>
    %288 = tpu.matmul %249, %287, %cst_100 {dimension_numbers = #tpu.dot_dimension_numbers<[1], [0], [0], [1], [0, 0, 1, 1], [], []>} : vector<8x10xf32>, vector<10x128xf32>, vector<8x128xf32> -> vector<8x128xf32>
    %289 = arith.addf %286, %288 : vector<8x128xf32>
    %290 = math.tanh %289 : vector<8x128xf32>
    %291 = arith.mulf %290, %15 : vector<8x128xf32>
    %292 = arith.addf %291, %18 : vector<8x128xf32>
    %293 = vector.extract_strided_slice %292 {offsets = [0, 0], sizes = [8, 10], strides = [1, 1]} : vector<8x128xf32> to vector<8x10xf32>
    %294 = vector.extract_strided_slice %292 {offsets = [0, 32], sizes = [8, 10], strides = [1, 1]} : vector<8x128xf32> to vector<8x10xf32>
    %295 = vector.extract_strided_slice %292 {offsets = [0, 64], sizes = [8, 10], strides = [1, 1]} : vector<8x128xf32> to vector<8x10xf32>
    %296 = vector.extract_strided_slice %292 {offsets = [0, 96], sizes = [8, 10], strides = [1, 1]} : vector<8x128xf32> to vector<8x10xf32>
    %297 = arith.mulf %294, %247 : vector<8x10xf32>
    %298 = arith.mulf %293, %295 : vector<8x10xf32>
    %299 = arith.addf %297, %298 : vector<8x10xf32>
    %300 = math.tanh %299 : vector<8x10xf32>
    %301 = arith.mulf %296, %300 : vector<8x10xf32>
    %c0_101 = arith.constant 0 : index
    %c0_102 = arith.constant 0 : index
    %302 = vector.load %arg4[%c0_101, %c0_102] : memref<10x128xf32, #tpu.memory_space<vmem>>, vector<10x128xf32>
    %cst_103 = arith.constant dense<0.000000e+00> : vector<8x128xf32>
    %303 = tpu.matmul %301, %302, %cst_103 {dimension_numbers = #tpu.dot_dimension_numbers<[1], [0], [0], [1], [0, 0, 1, 1], [], []>} : vector<8x10xf32>, vector<10x128xf32>, vector<8x128xf32> -> vector<8x128xf32>
    %c0_104 = arith.constant 0 : index
    %c0_105 = arith.constant 0 : index
    %304 = vector.load %arg5[%c0_104, %c0_105] : memref<10x128xf32, #tpu.memory_space<vmem>>, vector<10x128xf32>
    %cst_106 = arith.constant dense<0.000000e+00> : vector<8x128xf32>
    %305 = tpu.matmul %267, %304, %cst_106 {dimension_numbers = #tpu.dot_dimension_numbers<[1], [0], [0], [1], [0, 0, 1, 1], [], []>} : vector<8x10xf32>, vector<10x128xf32>, vector<8x128xf32> -> vector<8x128xf32>
    %306 = arith.addf %303, %305 : vector<8x128xf32>
    %307 = arith.addf %306, %21 : vector<8x128xf32>
    %308 = math.tanh %307 : vector<8x128xf32>
    %309 = arith.mulf %308, %15 : vector<8x128xf32>
    %310 = arith.addf %309, %18 : vector<8x128xf32>
    %311 = vector.extract_strided_slice %310 {offsets = [0, 0], sizes = [8, 10], strides = [1, 1]} : vector<8x128xf32> to vector<8x10xf32>
    %312 = vector.extract_strided_slice %310 {offsets = [0, 32], sizes = [8, 10], strides = [1, 1]} : vector<8x128xf32> to vector<8x10xf32>
    %313 = vector.extract_strided_slice %310 {offsets = [0, 64], sizes = [8, 10], strides = [1, 1]} : vector<8x128xf32> to vector<8x10xf32>
    %314 = vector.extract_strided_slice %310 {offsets = [0, 96], sizes = [8, 10], strides = [1, 1]} : vector<8x128xf32> to vector<8x10xf32>
    %315 = arith.mulf %312, %265 : vector<8x10xf32>
    %316 = arith.mulf %311, %313 : vector<8x10xf32>
    %317 = arith.addf %315, %316 : vector<8x10xf32>
    %318 = math.tanh %317 : vector<8x10xf32>
    %319 = arith.mulf %314, %318 : vector<8x10xf32>
    %c0_107 = arith.constant 0 : index
    %c0_108 = arith.constant 0 : index
    %320 = vector.load %arg7[%c0_107, %c0_108] : memref<10x128xf32, #tpu.memory_space<vmem>>, vector<10x128xf32>
    %cst_109 = arith.constant dense<0.000000e+00> : vector<8x128xf32>
    %321 = tpu.matmul %319, %320, %cst_109 {dimension_numbers = #tpu.dot_dimension_numbers<[1], [0], [0], [1], [0, 0, 1, 1], [], []>} : vector<8x10xf32>, vector<10x128xf32>, vector<8x128xf32> -> vector<8x128xf32>
    %c0_110 = arith.constant 0 : index
    %c0_111 = arith.constant 0 : index
    %322 = vector.load %arg8[%c0_110, %c0_111] : memref<10x128xf32, #tpu.memory_space<vmem>>, vector<10x128xf32>
    %cst_112 = arith.constant dense<0.000000e+00> : vector<8x128xf32>
    %323 = tpu.matmul %285, %322, %cst_112 {dimension_numbers = #tpu.dot_dimension_numbers<[1], [0], [0], [1], [0, 0, 1, 1], [], []>} : vector<8x10xf32>, vector<10x128xf32>, vector<8x128xf32> -> vector<8x128xf32>
    %324 = arith.addf %321, %323 : vector<8x128xf32>
    %325 = arith.addf %324, %24 : vector<8x128xf32>
    %326 = math.tanh %325 : vector<8x128xf32>
    %327 = arith.mulf %326, %15 : vector<8x128xf32>
    %328 = arith.addf %327, %18 : vector<8x128xf32>
    %329 = vector.extract_strided_slice %328 {offsets = [0, 0], sizes = [8, 10], strides = [1, 1]} : vector<8x128xf32> to vector<8x10xf32>
    %330 = vector.extract_strided_slice %328 {offsets = [0, 32], sizes = [8, 10], strides = [1, 1]} : vector<8x128xf32> to vector<8x10xf32>
    %331 = vector.extract_strided_slice %328 {offsets = [0, 64], sizes = [8, 10], strides = [1, 1]} : vector<8x128xf32> to vector<8x10xf32>
    %332 = vector.extract_strided_slice %328 {offsets = [0, 96], sizes = [8, 10], strides = [1, 1]} : vector<8x128xf32> to vector<8x10xf32>
    %333 = arith.mulf %330, %283 : vector<8x10xf32>
    %334 = arith.mulf %329, %331 : vector<8x10xf32>
    %335 = arith.addf %333, %334 : vector<8x10xf32>
    %336 = math.tanh %335 : vector<8x10xf32>
    %337 = arith.mulf %332, %336 : vector<8x10xf32>
    %c48 = arith.constant 48 : index
    %c0_113 = arith.constant 0 : index
    %338 = vector.load %arg13[%c48, %c0_113] : memref<64x128xf32, #tpu.memory_space<vmem>>, vector<8x128xf32>
    %c0_114 = arith.constant 0 : index
    %c0_115 = arith.constant 0 : index
    %339 = vector.load %arg2[%c0_114, %c0_115] : memref<10x128xf32, #tpu.memory_space<vmem>>, vector<10x128xf32>
    %cst_116 = arith.constant dense<0.000000e+00> : vector<8x128xf32>
    %340 = tpu.matmul %301, %339, %cst_116 {dimension_numbers = #tpu.dot_dimension_numbers<[1], [0], [0], [1], [0, 0, 1, 1], [], []>} : vector<8x10xf32>, vector<10x128xf32>, vector<8x128xf32> -> vector<8x128xf32>
    %341 = arith.addf %338, %340 : vector<8x128xf32>
    %342 = math.tanh %341 : vector<8x128xf32>
    %343 = arith.mulf %342, %15 : vector<8x128xf32>
    %344 = arith.addf %343, %18 : vector<8x128xf32>
    %345 = vector.extract_strided_slice %344 {offsets = [0, 0], sizes = [8, 10], strides = [1, 1]} : vector<8x128xf32> to vector<8x10xf32>
    %346 = vector.extract_strided_slice %344 {offsets = [0, 32], sizes = [8, 10], strides = [1, 1]} : vector<8x128xf32> to vector<8x10xf32>
    %347 = vector.extract_strided_slice %344 {offsets = [0, 64], sizes = [8, 10], strides = [1, 1]} : vector<8x128xf32> to vector<8x10xf32>
    %348 = vector.extract_strided_slice %344 {offsets = [0, 96], sizes = [8, 10], strides = [1, 1]} : vector<8x128xf32> to vector<8x10xf32>
    %349 = arith.mulf %346, %299 : vector<8x10xf32>
    %350 = arith.mulf %345, %347 : vector<8x10xf32>
    %351 = arith.addf %349, %350 : vector<8x10xf32>
    %352 = math.tanh %351 : vector<8x10xf32>
    %353 = arith.mulf %348, %352 : vector<8x10xf32>
    %c0_117 = arith.constant 0 : index
    %c0_118 = arith.constant 0 : index
    %354 = vector.load %arg4[%c0_117, %c0_118] : memref<10x128xf32, #tpu.memory_space<vmem>>, vector<10x128xf32>
    %cst_119 = arith.constant dense<0.000000e+00> : vector<8x128xf32>
    %355 = tpu.matmul %353, %354, %cst_119 {dimension_numbers = #tpu.dot_dimension_numbers<[1], [0], [0], [1], [0, 0, 1, 1], [], []>} : vector<8x10xf32>, vector<10x128xf32>, vector<8x128xf32> -> vector<8x128xf32>
    %c0_120 = arith.constant 0 : index
    %c0_121 = arith.constant 0 : index
    %356 = vector.load %arg5[%c0_120, %c0_121] : memref<10x128xf32, #tpu.memory_space<vmem>>, vector<10x128xf32>
    %cst_122 = arith.constant dense<0.000000e+00> : vector<8x128xf32>
    %357 = tpu.matmul %319, %356, %cst_122 {dimension_numbers = #tpu.dot_dimension_numbers<[1], [0], [0], [1], [0, 0, 1, 1], [], []>} : vector<8x10xf32>, vector<10x128xf32>, vector<8x128xf32> -> vector<8x128xf32>
    %358 = arith.addf %355, %357 : vector<8x128xf32>
    %359 = arith.addf %358, %21 : vector<8x128xf32>
    %360 = math.tanh %359 : vector<8x128xf32>
    %361 = arith.mulf %360, %15 : vector<8x128xf32>
    %362 = arith.addf %361, %18 : vector<8x128xf32>
    %363 = vector.extract_strided_slice %362 {offsets = [0, 0], sizes = [8, 10], strides = [1, 1]} : vector<8x128xf32> to vector<8x10xf32>
    %364 = vector.extract_strided_slice %362 {offsets = [0, 32], sizes = [8, 10], strides = [1, 1]} : vector<8x128xf32> to vector<8x10xf32>
    %365 = vector.extract_strided_slice %362 {offsets = [0, 64], sizes = [8, 10], strides = [1, 1]} : vector<8x128xf32> to vector<8x10xf32>
    %366 = vector.extract_strided_slice %362 {offsets = [0, 96], sizes = [8, 10], strides = [1, 1]} : vector<8x128xf32> to vector<8x10xf32>
    %367 = arith.mulf %364, %317 : vector<8x10xf32>
    %368 = arith.mulf %363, %365 : vector<8x10xf32>
    %369 = arith.addf %367, %368 : vector<8x10xf32>
    %370 = math.tanh %369 : vector<8x10xf32>
    %371 = arith.mulf %366, %370 : vector<8x10xf32>
    %c0_123 = arith.constant 0 : index
    %c0_124 = arith.constant 0 : index
    %372 = vector.load %arg7[%c0_123, %c0_124] : memref<10x128xf32, #tpu.memory_space<vmem>>, vector<10x128xf32>
    %cst_125 = arith.constant dense<0.000000e+00> : vector<8x128xf32>
    %373 = tpu.matmul %371, %372, %cst_125 {dimension_numbers = #tpu.dot_dimension_numbers<[1], [0], [0], [1], [0, 0, 1, 1], [], []>} : vector<8x10xf32>, vector<10x128xf32>, vector<8x128xf32> -> vector<8x128xf32>
    %c0_126 = arith.constant 0 : index
    %c0_127 = arith.constant 0 : index
    %374 = vector.load %arg8[%c0_126, %c0_127] : memref<10x128xf32, #tpu.memory_space<vmem>>, vector<10x128xf32>
    %cst_128 = arith.constant dense<0.000000e+00> : vector<8x128xf32>
    %375 = tpu.matmul %337, %374, %cst_128 {dimension_numbers = #tpu.dot_dimension_numbers<[1], [0], [0], [1], [0, 0, 1, 1], [], []>} : vector<8x10xf32>, vector<10x128xf32>, vector<8x128xf32> -> vector<8x128xf32>
    %376 = arith.addf %373, %375 : vector<8x128xf32>
    %377 = arith.addf %376, %24 : vector<8x128xf32>
    %378 = math.tanh %377 : vector<8x128xf32>
    %379 = arith.mulf %378, %15 : vector<8x128xf32>
    %380 = arith.addf %379, %18 : vector<8x128xf32>
    %381 = vector.extract_strided_slice %380 {offsets = [0, 0], sizes = [8, 10], strides = [1, 1]} : vector<8x128xf32> to vector<8x10xf32>
    %382 = vector.extract_strided_slice %380 {offsets = [0, 32], sizes = [8, 10], strides = [1, 1]} : vector<8x128xf32> to vector<8x10xf32>
    %383 = vector.extract_strided_slice %380 {offsets = [0, 64], sizes = [8, 10], strides = [1, 1]} : vector<8x128xf32> to vector<8x10xf32>
    %384 = vector.extract_strided_slice %380 {offsets = [0, 96], sizes = [8, 10], strides = [1, 1]} : vector<8x128xf32> to vector<8x10xf32>
    %385 = arith.mulf %382, %335 : vector<8x10xf32>
    %386 = arith.mulf %381, %383 : vector<8x10xf32>
    %387 = arith.addf %385, %386 : vector<8x10xf32>
    %388 = math.tanh %387 : vector<8x10xf32>
    %389 = arith.mulf %384, %388 : vector<8x10xf32>
    %c56 = arith.constant 56 : index
    %c0_129 = arith.constant 0 : index
    %390 = vector.load %arg13[%c56, %c0_129] : memref<64x128xf32, #tpu.memory_space<vmem>>, vector<8x128xf32>
    %c0_130 = arith.constant 0 : index
    %c0_131 = arith.constant 0 : index
    %391 = vector.load %arg2[%c0_130, %c0_131] : memref<10x128xf32, #tpu.memory_space<vmem>>, vector<10x128xf32>
    %cst_132 = arith.constant dense<0.000000e+00> : vector<8x128xf32>
    %392 = tpu.matmul %353, %391, %cst_132 {dimension_numbers = #tpu.dot_dimension_numbers<[1], [0], [0], [1], [0, 0, 1, 1], [], []>} : vector<8x10xf32>, vector<10x128xf32>, vector<8x128xf32> -> vector<8x128xf32>
    %393 = arith.addf %390, %392 : vector<8x128xf32>
    %394 = math.tanh %393 : vector<8x128xf32>
    %395 = arith.mulf %394, %15 : vector<8x128xf32>
    %396 = arith.addf %395, %18 : vector<8x128xf32>
    %397 = vector.extract_strided_slice %396 {offsets = [0, 0], sizes = [8, 10], strides = [1, 1]} : vector<8x128xf32> to vector<8x10xf32>
    %398 = vector.extract_strided_slice %396 {offsets = [0, 32], sizes = [8, 10], strides = [1, 1]} : vector<8x128xf32> to vector<8x10xf32>
    %399 = vector.extract_strided_slice %396 {offsets = [0, 64], sizes = [8, 10], strides = [1, 1]} : vector<8x128xf32> to vector<8x10xf32>
    %400 = vector.extract_strided_slice %396 {offsets = [0, 96], sizes = [8, 10], strides = [1, 1]} : vector<8x128xf32> to vector<8x10xf32>
    %401 = arith.mulf %398, %351 : vector<8x10xf32>
    %402 = arith.mulf %397, %399 : vector<8x10xf32>
    %403 = arith.addf %401, %402 : vector<8x10xf32>
    %404 = math.tanh %403 : vector<8x10xf32>
    %405 = arith.mulf %400, %404 : vector<8x10xf32>
    %c0_133 = arith.constant 0 : index
    %c0_134 = arith.constant 0 : index
    %406 = vector.load %arg4[%c0_133, %c0_134] : memref<10x128xf32, #tpu.memory_space<vmem>>, vector<10x128xf32>
    %cst_135 = arith.constant dense<0.000000e+00> : vector<8x128xf32>
    %407 = tpu.matmul %405, %406, %cst_135 {dimension_numbers = #tpu.dot_dimension_numbers<[1], [0], [0], [1], [0, 0, 1, 1], [], []>} : vector<8x10xf32>, vector<10x128xf32>, vector<8x128xf32> -> vector<8x128xf32>
    %c0_136 = arith.constant 0 : index
    %c0_137 = arith.constant 0 : index
    %408 = vector.load %arg5[%c0_136, %c0_137] : memref<10x128xf32, #tpu.memory_space<vmem>>, vector<10x128xf32>
    %cst_138 = arith.constant dense<0.000000e+00> : vector<8x128xf32>
    %409 = tpu.matmul %371, %408, %cst_138 {dimension_numbers = #tpu.dot_dimension_numbers<[1], [0], [0], [1], [0, 0, 1, 1], [], []>} : vector<8x10xf32>, vector<10x128xf32>, vector<8x128xf32> -> vector<8x128xf32>
    %410 = arith.addf %407, %409 : vector<8x128xf32>
    %411 = arith.addf %410, %21 : vector<8x128xf32>
    %412 = math.tanh %411 : vector<8x128xf32>
    %413 = arith.mulf %412, %15 : vector<8x128xf32>
    %414 = arith.addf %413, %18 : vector<8x128xf32>
    %415 = vector.extract_strided_slice %414 {offsets = [0, 0], sizes = [8, 10], strides = [1, 1]} : vector<8x128xf32> to vector<8x10xf32>
    %416 = vector.extract_strided_slice %414 {offsets = [0, 32], sizes = [8, 10], strides = [1, 1]} : vector<8x128xf32> to vector<8x10xf32>
    %417 = vector.extract_strided_slice %414 {offsets = [0, 64], sizes = [8, 10], strides = [1, 1]} : vector<8x128xf32> to vector<8x10xf32>
    %418 = vector.extract_strided_slice %414 {offsets = [0, 96], sizes = [8, 10], strides = [1, 1]} : vector<8x128xf32> to vector<8x10xf32>
    %419 = arith.mulf %416, %369 : vector<8x10xf32>
    %420 = arith.mulf %415, %417 : vector<8x10xf32>
    %421 = arith.addf %419, %420 : vector<8x10xf32>
    %422 = math.tanh %421 : vector<8x10xf32>
    %423 = arith.mulf %418, %422 : vector<8x10xf32>
    %c0_139 = arith.constant 0 : index
    %c0_140 = arith.constant 0 : index
    %424 = vector.load %arg7[%c0_139, %c0_140] : memref<10x128xf32, #tpu.memory_space<vmem>>, vector<10x128xf32>
    %cst_141 = arith.constant dense<0.000000e+00> : vector<8x128xf32>
    %425 = tpu.matmul %423, %424, %cst_141 {dimension_numbers = #tpu.dot_dimension_numbers<[1], [0], [0], [1], [0, 0, 1, 1], [], []>} : vector<8x10xf32>, vector<10x128xf32>, vector<8x128xf32> -> vector<8x128xf32>
    %c0_142 = arith.constant 0 : index
    %c0_143 = arith.constant 0 : index
    %426 = vector.load %arg8[%c0_142, %c0_143] : memref<10x128xf32, #tpu.memory_space<vmem>>, vector<10x128xf32>
    %cst_144 = arith.constant dense<0.000000e+00> : vector<8x128xf32>
    %427 = tpu.matmul %389, %426, %cst_144 {dimension_numbers = #tpu.dot_dimension_numbers<[1], [0], [0], [1], [0, 0, 1, 1], [], []>} : vector<8x10xf32>, vector<10x128xf32>, vector<8x128xf32> -> vector<8x128xf32>
    %428 = arith.addf %425, %427 : vector<8x128xf32>
    %429 = arith.addf %428, %24 : vector<8x128xf32>
    %430 = math.tanh %429 : vector<8x128xf32>
    %431 = arith.mulf %430, %15 : vector<8x128xf32>
    %432 = arith.addf %431, %18 : vector<8x128xf32>
    %433 = vector.extract_strided_slice %432 {offsets = [0, 0], sizes = [8, 10], strides = [1, 1]} : vector<8x128xf32> to vector<8x10xf32>
    %434 = vector.extract_strided_slice %432 {offsets = [0, 32], sizes = [8, 10], strides = [1, 1]} : vector<8x128xf32> to vector<8x10xf32>
    %435 = vector.extract_strided_slice %432 {offsets = [0, 64], sizes = [8, 10], strides = [1, 1]} : vector<8x128xf32> to vector<8x10xf32>
    %436 = vector.extract_strided_slice %432 {offsets = [0, 96], sizes = [8, 10], strides = [1, 1]} : vector<8x128xf32> to vector<8x10xf32>
    %437 = arith.mulf %434, %387 : vector<8x10xf32>
    %438 = arith.mulf %433, %435 : vector<8x10xf32>
    %439 = arith.addf %437, %438 : vector<8x10xf32>
    %440 = math.tanh %439 : vector<8x10xf32>
    %441 = arith.mulf %436, %440 : vector<8x10xf32>
    %c0_145 = arith.constant 0 : index
    %c0_146 = arith.constant 0 : index
    %442 = vector.load %arg10[%c0_145, %c0_146] : memref<10x3xf32, #tpu.memory_space<vmem>>, vector<10x3xf32>
    %cst_147 = arith.constant dense<0.000000e+00> : vector<8x3xf32>
    %443 = tpu.matmul %441, %442, %cst_147 {dimension_numbers = #tpu.dot_dimension_numbers<[1], [0], [0], [1], [0, 0, 1, 1], [], []>} : vector<8x10xf32>, vector<10x3xf32>, vector<8x3xf32> -> vector<8x3xf32>
    %c0_148 = arith.constant 0 : index
    %c0_149 = arith.constant 0 : index
    %444 = vector.load %arg11[%c0_148, %c0_149] : memref<1x3xf32, #tpu.memory_space<vmem>>, vector<1x3xf32>
    %445 = vector.broadcast %444 : vector<1x3xf32> to vector<8x3xf32>
    %446 = arith.addf %443, %445 : vector<8x3xf32>
    %c0_150 = arith.constant 0 : index
    %c0_151 = arith.constant 0 : index
    %447 = vector.load %arg12[%c0_150, %c0_151] : memref<8x3xf32, #tpu.memory_space<vmem>>, vector<8x3xf32>
    tpu.vector_store %arg12[%c0_150, %c0_151], %446 {strides = array<i32>} : memref<8x3xf32, #tpu.memory_space<vmem>>, vector<8x3xf32>,
    return
  }
}

</mosaic_0001>

<bundles_post_ra>
// kernel: ann_forward.1
= control target key start
LH: loop header
LB: loop body
LE: loop exit
PB: predicated region body
PF: predicated region fallthrough
CT: control target
= control target key end

     0   :  { %vm79_vm0 = vcmask 1043456   ;;  %vm154_vm1 = vcmask 1041408   ;;  %vm54_vm2 = vcmask 31744   ;;  %v1841_v4 = vmov 0.0   ;;  %s1844_s30 = smov 32   ;;  %s2437_s1 = inlined_call_operand.vmem [shape: f32[4,128], index: 1, kind: input, shape index: {}]   ;;  %s2438_s2 = inlined_call_operand.vmem [shape: f32[10,128], index: 2, kind: input, shape index: {}]   ;;  %s2439_s0 = inlined_call_operand.vmem [shape: f32[64,4], index: 0, kind: input, shape index: {}]   ;;  %s2440_s3 = inlined_call_operand.vmem [shape: f32[1,128], index: 3, kind: input, shape index: {}]   ;;  %s2441_s5 = inlined_call_operand.vmem [shape: f32[10,128], index: 5, kind: input, shape index: {}]   ;;  %s2442_s4 = inlined_call_operand.vmem [shape: f32[10,128], index: 4, kind: input, shape index: {}]   ;;  %s2443_s6 = inlined_call_operand.vmem [shape: f32[1,128], index: 6, kind: input, shape index: {}]   ;;  %s2444_s8 = inlined_call_operand.vmem [shape: f32[10,128], index: 8, kind: input, shape index: {}]   ;;  %s2445_s7 = inlined_call_operand.vmem [shape: f32[10,128], index: 7, kind: input, shape index: {}]   ;;  %s2446_s9 = inlined_call_operand.vmem [shape: f32[1,128], index: 9, kind: input, shape index: {}]   ;;  %s2447_s11 = inlined_call_operand.vmem [shape: f32[1,3], index: 11, kind: input, shape index: {}]   ;;  %s2448_s10 = inlined_call_operand.vmem [shape: f32[10,3], index: 10, kind: input, shape index: {}]   ;;  %s2449_s12 = inlined_call_operand.vmem [shape: f32[8,3], index: 12, kind: output, shape index: {}]  }
   0x1   :  { %v49_v0 = vld [vmem:[%s2437_s1] sm:$0xf]  ;;  %v1916_v1 = vld [vmem:[%s2438_s2 + $0x8] sm:$0x3]  ;;  %v132_v5 = vlaneseq  ;;  %v1842_v12 = vmov 0.5   ;;  %vm150_vm6 = vcmask 80896  }
   0x2   :  { %v41_v2 = vld [vmem:[%s2439_s0] sm:$0xff]  ;;  %1644 = vmatpush.msk.msra.mxu0 %vm79_vm0, %v49_v0  ;;  %1653 = vmatpush.msk.msra.mxu1 %vm154_vm1, %v1916_v1  ;;  %v1949_v24 = vld [vmem:[%s2441_s5 + $0x8] sm:$0x3]  ;;  %vm1638_vm7 = vcmask 23552  }
   0x3   :  { %v1926_v3 = vld [vmem:[%s2438_s2] sm:$0xff]  ;;  %1645 = vmatmul.msk.f32.vlgmr.msra.gmra.mxu0 %vm54_vm2, %v41_v2  ;;  %v133_v7 = vand.u32 127, %v132_v5  ;;  %s1843_s2 = smov 64   ;;  %v1954_v25 = vld [vmem:[%s2442_s4 + $0x8] sm:$0x3]  ;;  %1654 = vmatpush.msk.msra.mxu2 %vm154_vm1, %v1949_v24  ;;  %v43_v5 = vld [vmem:[%s2439_s0 + $0x10] sm:$0xff] }
   0x4   :  { %173 = vmatpush.msra.mxu1 %v1926_v3  ;;  %v1934_v6 = vld [vmem:[%s2440_s3] ss:$0 sm:$0xff]  ;;  %1655 = vmatpush.msk.msra.mxu3 %vm154_vm1, %v1954_v25  ;;  %v42_v30 = vld [vmem:[%s2439_s0 + $0x8] sm:$0xff] }
   0x5   :  { %174 = vmatmul.f32.vlgmr.msra.gmra.mxu1 %v1841_v4  ;;  %vm134_vm3 = vcmp.ge.s32.totalorder %v133_v7, 64  ;;  %vm135_vm4 = vcmp.lt.s32.totalorder %v133_v7, 96  ;;  %v1959_v26 = vld [vmem:[%s2441_s5] sm:$0xff]  ;;  %v2010_v61 = vld [vmem:[%s2444_s8 + $0x8] sm:$0x3] }
   0x6   :  { %vm136_vm5 = vmand %vm134_vm3, %vm135_vm4  ;;  %v1968_v27 = vld [vmem:[%s2442_s4] sm:$0xff]  ;;  %221 = vmatpush.msra.mxu2 %v1959_v26  ;;  %v2020_v63 = vld [vmem:[%s2445_s7 + $0x8] sm:$0x3]  ;;  %1657 = vmatpush.msk.msrb.mxu1 %vm154_vm1, %v2010_v61 }
   0x7   :  { %v1937_v13 = vsel %vm136_vm5, 1.0, %v1842_v12  ;;  %v1939_v15 = vsel %vm136_vm5, 0.0, %v1842_v12  ;;  %249 = vmatpush.msra.mxu3 %v1968_v27  ;;  %222 = vmatmul.f32.vlgmr.msra.gmra.mxu2 %v1841_v4  ;;  %v1986_v33 = vld [vmem:[%s2443_s6] ss:$0 sm:$0xff] }
   0x8   :  { %v2015_v62 = vld [vmem:[%s2444_s8] sm:$0xff]  ;;  %1658 = vmatpush.msk.msrb.mxu2 %vm154_vm1, %v2020_v63  ;;  %1698 = vmatpush.msk.msrb.mxu0 %vm154_vm1, %v2020_v63 }
   0x9   :  { %1660 = vmatpush.msk.msrb.mxu3 %vm154_vm1, %v1916_v1  ;;  %v2029_v0 = vld [vmem:[%s2445_s7] sm:$0xff]  ;;  %297 = vmatpush.msrb.mxu1 %v2015_v62 }
   0xa   :  { %325 = vmatpush.msrb.mxu2 %v2029_v0  ;;  %1041 = vmatpush.msrb.mxu0 %v2029_v0 }
   0xb   :  { %367 = vmatpush.msrb.mxu3 %v1926_v3  ;;  %1646 = vmatmul.msk.f32.gmra.mxu0 %vm54_vm2, %v42_v30 }
   0xc   :  { %1664 = vmatpush.msk.msra.mxu2 %vm154_vm1, %v1954_v25  ;;  %1662 = vmatpush.msk.msra.mxu1 %vm154_vm1, %v1949_v24 }
   0xd   :  { %298 = vmatmul.f32.vlgmr.msrb.gmra.mxu1 %v1841_v4  ;;  %1706 = vmatpush.msk.msra.mxu0 %vm154_vm1, %v2010_v61 }
   0xe   :  { %433 = vmatpush.msra.mxu2 %v1968_v27  ;;  %408 = vmatpush.msra.mxu1 %v1959_v26 }
   0xf   :  { %1195 = vmatpush.msra.mxu0 %v2015_v62 }
  0x10   :  { %1668 = vmatpush.msk.msrb.mxu1 %vm154_vm1, %v2020_v63 }
  0x12   :  { %504 = vmatpush.msrb.mxu1 %v2029_v0 }
  0x13   :  { %1647 = vmatmul.msk.f32.gmra.mxu0 %vm54_vm2, %v43_v5 }
  0x80   :  { %v100_v8 = vpop.f32.mrf.mxu0 }
  0x81   :  { %v101_v9 = vadd.f32 %v1934_v6, %v100_v8 }
  0x82   :  { %v175_v10 = vpop.f32.mrf.mxu1 }
  0x83   :  { %v178_v11 = vadd.f32 %v175_v10, %v101_v9  ;;  %v2079_v10 = vld [vmem:[%s2446_s9] ss:$0 sm:$0xff] }
  0x85   :  { %1740 = vtanh.f32 %v178_v11 }
  0x88   :  { %v103_v36 = vpop.f32.mrf.mxu0 }
  0x89   :  { %v104_v38 = vadd.f32 %v1934_v6, %v103_v36 }
  0x8a   :  { %v223_v32 = vpop.f32.mrf.mxu2  ;;  %v299_v9 = vpop.f32.mrf.mxu1 }
  0x8b   :  { %v1741_v14 = vpop.eup %1740 }
  0x8c   :  { %v180_v16 = vmul.f32 %v1741_v14, %v1937_v13 }
  0x8e   :  { %v181_v17 = vadd.f32 %v180_v16, %v1939_v15 }
  0x90   :  { %184 = vrot.lane.b32.xlu0 %v181_v17, %s1843_s2  ;;  %v182_v20 = vmul.f32 0.0, %v181_v17 }
 0x102   :  { %v185_v18 = vpop.permute.xlu0 %184 }
 0x103   :  { %v187_v19 = vmul.f32 %v185_v18, %v181_v17 }
 0x105   :  { %189 = vrot.lane.b32.xlu0 %v187_v19, %s1844_s30  ;;  %v106_v19 = vpop.f32.mrf.mxu0 }
 0x177   :  { %v190_v21 = vpop.permute.xlu0 %189 }
 0x178   :  { %v192_v22 = vadd.f32 %v190_v21, %v182_v20 }
 0x17a   :  { %1742 = vtanh.f32 %v192_v22 }
 0x180   :  { %v1743_v23 = vpop.eup %1742 }
 0x181   :  { %195 = vrot.lane.b32.xlu1 %v1743_v23, %s1843_s2  ;;  %v107_v23 = vadd.f32 %v1934_v6, %v106_v19 }
 0x1f3   :  { %v196_v28 = vpop.permute.xlu1 %195 }
 0x1f4   :  { %v198_v29 = vmul.f32 %v196_v28, %v181_v17 }
 0x1f6   :  { %227 = vrot.lane.b32.xlu1 %v198_v29, %s1844_s30 }
 0x268   :  { %v228_v31 = vpop.permute.xlu1 %227 }
 0x269   :  { %1656 = vmatmul.msk.f32.vlgmr.msra.gmra.mxu3 %vm150_vm6, %v228_v31 }
 0x26a   :  { %1666 = vmatpush.msk.msra.mxu3 %vm154_vm1, %v2010_v61 }
 0x26c   :  { %479 = vmatpush.msra.mxu3 %v2015_v62 }
 0x271   :  { %1661 = vmatmul.msk.f32.vlgmr.msrb.gmra.mxu3 %vm150_vm6, %v228_v31 }
 0x272   :  { %1672 = vmatpush.msk.msrb.mxu3 %vm154_vm1, %v1949_v24 }
 0x274   :  { %587 = vmatpush.msrb.mxu3 %v1959_v26 }
 0x2ec   :  { %v251_v34 = vpop.f32.mrf.mxu3 }
 0x2ed   :  { %v252_v35 = vadd.f32 %v251_v34, %v223_v32 }
 0x2ef   :  { %v254_v37 = vadd.f32 %v1986_v33, %v252_v35 }
 0x2f1   :  { %1744 = vtanh.f32 %v254_v37 }
 0x2f4   :  { %v369_v39 = vpop.f32.mrf.mxu3 }
 0x2f5   :  { %v372_v40 = vadd.f32 %v369_v39, %v104_v38 }
 0x2f7   :  { %v1745_v41 = vpop.eup %1744  ;;  %1746 = vtanh.f32 %v372_v40 }
 0x2f8   :  { %v256_v42 = vmul.f32 %v1745_v41, %v1937_v13 }
 0x2fa   :  { %v257_v43 = vadd.f32 %v256_v42, %v1939_v15 }
 0x2fc   :  { %260 = vrot.lane.b32.xlu2 %v257_v43, %s1843_s2  ;;  %v258_v51 = vmul.f32 0.0, %v257_v43 }
 0x2fd   :  { %v1747_v44 = vpop.eup %1746 }
 0x2fe   :  { %v374_v45 = vmul.f32 %v1747_v44, %v1937_v13 }
 0x300   :  { %v375_v46 = vadd.f32 %v374_v45, %v1939_v15 }
 0x302   :  { %v376_v54 = vmul.f32 %v375_v46, %v192_v22 }
 0x304   :  { %378 = vrot.lane.b32.xlu2 %v375_v46, %s1843_s2 }
 0x356   :  { %v261_v47 = vpop.permute.xlu2 %260 }
 0x357   :  { %v263_v48 = vmul.f32 %v261_v47, %v257_v43 }
 0x359   :  { %265 = vrot.lane.b32.xlu0 %v263_v48, %s1844_s30 }
 0x35e   :  { %v379_v49 = vpop.permute.xlu2 %378 }
 0x35f   :  { %v381_v50 = vmul.f32 %v379_v49, %v375_v46 }
 0x361   :  { %383 = vrot.lane.b32.xlu1 %v381_v50, %s1844_s30 }
 0x3cb   :  { %v266_v52 = vpop.permute.xlu0 %265 }
 0x3cc   :  { %v1998_v53 = vadd.f32 %v266_v52, %v258_v51 }
 0x3ce   :  { %1748 = vtanh.f32 %v1998_v53 }
 0x3d3   :  { %v384_v55 = vpop.permute.xlu1 %383 }
 0x3d4   :  { %v1749_v56 = vpop.eup %1748  ;;  %v2001_v57 = vadd.f32 %v384_v55, %v376_v54 }
 0x3d5   :  { %271 = vrot.lane.b32.xlu2 %v1749_v56, %s1843_s2 }
 0x3d6   :  { %1750 = vtanh.f32 %v2001_v57 }
 0x3dc   :  { %v1751_v58 = vpop.eup %1750 }
 0x3dd   :  { %389 = vrot.lane.b32.xlu0 %v1751_v58, %s1843_s2 }
 0x42f   :  { %v272_v59 = vpop.permute.xlu2 %271 }
 0x430   :  { %v274_v60 = vmul.f32 %v272_v59, %v257_v43 }
 0x432   :  { %303 = vrot.lane.b32.xlu1 %v274_v60, %s1844_s30 }
 0x44f   :  { %v390_v2 = vpop.permute.xlu0 %389 }
 0x450   :  { %v392_v4 = vmul.f32 %v390_v2, %v375_v46 }
 0x452   :  { %414 = vrot.lane.b32.xlu2 %v392_v4, %s1844_s30  ;;  %v44_v4 = vld [vmem:[%s2439_s0 + $0x18] sm:$0xff] }
 0x453   :  { %1648 = vmatmul.msk.f32.gmra.mxu0 %vm54_vm2, %v44_v4  ;;  %v45_v4 = vld [vmem:[%s2439_s0 + $0x20] sm:$0xff] }
 0x45b   :  { %1649 = vmatmul.msk.f32.gmra.mxu0 %vm54_vm2, %v45_v4  ;;  %v46_v4 = vld [vmem:[%s2439_s0 + $0x28] sm:$0xff] }
 0x463   :  { %1650 = vmatmul.msk.f32.gmra.mxu0 %vm54_vm2, %v46_v4 }
 0x4a4   :  { %v304_v7 = vpop.permute.xlu1 %303 }
 0x4a5   :  { %1659 = vmatmul.msk.f32.vlgmr.msrb.gmra.mxu2 %vm150_vm6, %v304_v7  ;;  %1663 = vmatmul.msk.f32.vlgmr.msra.gmra.mxu1 %vm150_vm6, %v304_v7 }
 0x4a6   :  { %1670 = vmatpush.msk.msrb.mxu2 %vm154_vm1, %v1916_v1  ;;  %1674 = vmatpush.msk.msra.mxu1 %vm154_vm1, %v1954_v25 }
 0x4a8   :  { %546 = vmatpush.msrb.mxu2 %v1926_v3  ;;  %612 = vmatpush.msra.mxu1 %v1968_v27 }
 0x4ac   :  { %v415_v8 = vpop.permute.xlu2 %414 }
 0x4ad   :  { %1665 = vmatmul.msk.f32.vlgmr.msra.gmra.mxu2 %vm150_vm6, %v415_v8 }
 0x4ae   :  { %1676 = vmatpush.msk.msra.mxu2 %vm154_vm1, %v2010_v61 }
 0x4b0   :  { %658 = vmatpush.msra.mxu2 %v2015_v62 }
 0x4b5   :  { %1671 = vmatmul.msk.f32.vlgmr.msrb.gmra.mxu2 %vm150_vm6, %v415_v8 }
 0x4b6   :  { %1682 = vmatpush.msk.msrb.mxu2 %vm154_vm1, %v1949_v24 }
 0x4b8   :  { %766 = vmatpush.msrb.mxu2 %v1959_v26 }
 0x4d0   :  { %v109_v19 = vpop.f32.mrf.mxu0 }
 0x522   :  { %v410_v16 = vpop.f32.mrf.mxu1 }
 0x528   :  { %v327_v11 = vpop.f32.mrf.mxu2 }
 0x529   :  { %v328_v12 = vadd.f32 %v327_v11, %v299_v9 }
 0x52b   :  { %v330_v14 = vadd.f32 %v2079_v10, %v328_v12 }
 0x52d   :  { %1752 = vtanh.f32 %v330_v14 }
 0x530   :  { %v435_v17 = vpop.f32.mrf.mxu2 }
 0x531   :  { %v436_v18 = vadd.f32 %v435_v17, %v410_v16 }
 0x533   :  { %v1753_v20 = vpop.eup %1752  ;;  %v438_v21 = vadd.f32 %v1986_v33, %v436_v18 }
 0x534   :  { %v332_v22 = vmul.f32 %v1753_v20, %v1937_v13 }
 0x535   :  { %1754 = vtanh.f32 %v438_v21 }
 0x536   :  { %v333_v28 = vadd.f32 %v332_v22, %v1939_v15 }
 0x538   :  { %336 = vrot.lane.b32.xlu0 %v333_v28, %s1843_s2  ;;  %v548_v29 = vpop.f32.mrf.mxu2  ;;  %v334_v48 = vmul.f32 0.0, %v333_v28 }
 0x539   :  { %v551_v30 = vadd.f32 %v548_v29, %v107_v23  ;;  %v110_v23 = vadd.f32 %v1934_v6, %v109_v19  ;;  %v112_v19 = vpop.f32.mrf.mxu0 }
 0x53b   :  { %v1755_v31 = vpop.eup %1754  ;;  %1756 = vtanh.f32 %v551_v30 }
 0x53c   :  { %v440_v32 = vmul.f32 %v1755_v31, %v1937_v13 }
 0x53e   :  { %v441_v34 = vadd.f32 %v440_v32, %v1939_v15 }
 0x540   :  { %444 = vrot.lane.b32.xlu1 %v441_v34, %s1843_s2  ;;  %v442_v51 = vmul.f32 %v441_v34, %v1998_v53 }
 0x541   :  { %v1757_v35 = vpop.eup %1756 }
 0x542   :  { %v553_v36 = vmul.f32 %v1757_v35, %v1937_v13 }
 0x544   :  { %v554_v37 = vadd.f32 %v553_v36, %v1939_v15 }
 0x546   :  { %557 = vrot.lane.b32.xlu2 %v554_v37, %s1843_s2  ;;  %v555_v44 = vmul.f32 %v554_v37, %v2001_v57 }
 0x5a0   :  { %v558_v38 = vpop.permute.xlu2 %557 }
 0x5a1   :  { %v560_v39 = vmul.f32 %v558_v38, %v554_v37 }
 0x5a3   :  { %562 = vrot.lane.b32.xlu2 %v560_v39, %s1844_s30 }
 0x5aa   :  { %v337_v40 = vpop.permute.xlu0 %336 }
 0x5ab   :  { %v339_v41 = vmul.f32 %v337_v40, %v333_v28 }
 0x5ad   :  { %341 = vrot.lane.b32.xlu0 %v339_v41, %s1844_s30 }
 0x5b2   :  { %v445_v42 = vpop.permute.xlu1 %444 }
 0x5b3   :  { %v447_v43 = vmul.f32 %v445_v42, %v441_v34 }
 0x5b5   :  { %449 = vrot.lane.b32.xlu1 %v447_v43, %s1844_s30 }
 0x5fd   :  { %v563_v45 = vpop.permute.xlu2 %562 }
 0x5fe   :  { %v2097_v46 = vadd.f32 %v563_v45, %v555_v44 }
 0x600   :  { %1758 = vtanh.f32 %v2097_v46 }
 0x606   :  { %v1759_v47 = vpop.eup %1758 }
 0x607   :  { %568 = vrot.lane.b32.xlu2 %v1759_v47, %s1843_s2 }
 0x61f   :  { %v342_v49 = vpop.permute.xlu0 %341 }
 0x620   :  { %v2101_v50 = vadd.f32 %v342_v49, %v334_v48 }
 0x622   :  { %1760 = vtanh.f32 %v2101_v50 }
 0x627   :  { %v450_v52 = vpop.permute.xlu1 %449 }
 0x628   :  { %v1761_v54 = vpop.eup %1760  ;;  %v2105_v55 = vadd.f32 %v450_v52, %v442_v51 }
 0x629   :  { %347 = vrot.lane.b32.xlu0 %v1761_v54, %s1843_s2 }
 0x62a   :  { %1762 = vtanh.f32 %v2105_v55 }
 0x630   :  { %v1763_v56 = vpop.eup %1762 }
 0x631   :  { %455 = vrot.lane.b32.xlu1 %v1763_v56, %s1843_s2 }
 0x661   :  { %v569_v57 = vpop.permute.xlu2 %568 }
 0x662   :  { %v571_v58 = vmul.f32 %v569_v57, %v554_v37 }
 0x664   :  { %593 = vrot.lane.b32.xlu2 %v571_v58, %s1844_s30 }
 0x69b   :  { %v348_v59 = vpop.permute.xlu0 %347 }
 0x69c   :  { %v350_v60 = vmul.f32 %v348_v59, %v333_v28 }
 0x69e   :  { %460 = vrot.lane.b32.xlu0 %v350_v60, %s1844_s30 }
 0x6a3   :  { %v456_v53 = vpop.permute.xlu1 %455 }
 0x6a4   :  { %v458_v2 = vmul.f32 %v456_v53, %v441_v34 }
 0x6a6   :  { %485 = vrot.lane.b32.xlu1 %v458_v2, %s1844_s30 }
 0x6be   :  { %v594_v8 = vpop.permute.xlu2 %593 }
 0x710   :  { %v461_v5 = vpop.permute.xlu0 %460 }
 0x711   :  { %1667 = vmatmul.msk.f32.vlgmr.msra.gmra.mxu3 %vm150_vm6, %v461_v5 }
 0x712   :  { %1678 = vmatpush.msk.msra.mxu3 %vm154_vm1, %v2020_v63 }
 0x714   :  { %683 = vmatpush.msra.mxu3 %v2029_v0 }
 0x718   :  { %v486_v7 = vpop.permute.xlu1 %485 }
 0x719   :  { %1669 = vmatmul.msk.f32.vlgmr.msrb.gmra.mxu1 %vm150_vm6, %v486_v7  ;;  %1673 = vmatmul.msk.f32.vlgmr.msrb.gmra.mxu3 %vm150_vm6, %v486_v7 }
 0x71a   :  { %1680 = vmatpush.msk.msrb.mxu1 %vm154_vm1, %v1916_v1  ;;  %1684 = vmatpush.msk.msrb.mxu3 %vm154_vm1, %v1954_v25 }
 0x71c   :  { %725 = vmatpush.msrb.mxu1 %v1926_v3  ;;  %791 = vmatpush.msrb.mxu3 %v1968_v27 }
 0x721   :  { %1675 = vmatmul.msk.f32.vlgmr.msra.gmra.mxu1 %vm150_vm6, %v594_v8 }
 0x722   :  { %1686 = vmatpush.msk.msra.mxu1 %vm154_vm1, %v2010_v61 }
 0x724   :  { %837 = vmatpush.msra.mxu1 %v2015_v62 }
 0x729   :  { %1681 = vmatmul.msk.f32.vlgmr.msrb.gmra.mxu1 %vm150_vm6, %v594_v8 }
 0x72a   :  { %1692 = vmatpush.msk.msrb.mxu1 %vm154_vm1, %v1949_v24 }
 0x72c   :  { %945 = vmatpush.msrb.mxu1 %v1959_v26 }
 0x794   :  { %v481_v9 = vpop.f32.mrf.mxu3 }
 0x796   :  { %v506_v11 = vpop.f32.mrf.mxu1 }
 0x797   :  { %v507_v12 = vadd.f32 %v506_v11, %v481_v9 }
 0x799   :  { %v509_v14 = vadd.f32 %v2079_v10, %v507_v12 }
 0x79b   :  { %1764 = vtanh.f32 %v509_v14 }
 0x79c   :  { %v589_v16 = vpop.f32.mrf.mxu3 }
 0x79e   :  { %v614_v17 = vpop.f32.mrf.mxu1 }
 0x79f   :  { %v615_v18 = vadd.f32 %v614_v17, %v589_v16 }
 0x7a1   :  { %v1765_v20 = vpop.eup %1764  ;;  %v617_v21 = vadd.f32 %v1986_v33, %v615_v18 }
 0x7a2   :  { %v511_v22 = vmul.f32 %v1765_v20, %v1937_v13 }
 0x7a3   :  { %1766 = vtanh.f32 %v617_v21 }
 0x7a4   :  { %v512_v28 = vadd.f32 %v511_v22, %v1939_v15 }
 0x7a6   :  { %v727_v29 = vpop.f32.mrf.mxu1  ;;  %515 = vrot.lane.b32.xlu0 %v512_v28, %s1843_s2  ;;  %v513_v49 = vmul.f32 %v512_v28, %v2101_v50 }
 0x7a7   :  { %v730_v30 = vadd.f32 %v727_v29, %v110_v23  ;;  %v113_v23 = vadd.f32 %v1934_v6, %v112_v19 }
 0x7a9   :  { %v1767_v31 = vpop.eup %1766  ;;  %1768 = vtanh.f32 %v730_v30 }
 0x7aa   :  { %v619_v32 = vmul.f32 %v1767_v31, %v1937_v13 }
 0x7ac   :  { %v620_v34 = vadd.f32 %v619_v32, %v1939_v15 }
 0x7ae   :  { %623 = vrot.lane.b32.xlu1 %v620_v34, %s1843_s2  ;;  %v621_v54 = vmul.f32 %v620_v34, %v2105_v55 }
 0x7af   :  { %v1769_v35 = vpop.eup %1768 }
 0x7b0   :  { %v732_v36 = vmul.f32 %v1769_v35, %v1937_v13 }
 0x7b2   :  { %v733_v37 = vadd.f32 %v732_v36, %v1939_v15 }
 0x7b4   :  { %736 = vrot.lane.b32.xlu2 %v733_v37, %s1843_s2  ;;  %v734_v44 = vmul.f32 %v733_v37, %v2097_v46 }
 0x80e   :  { %v737_v38 = vpop.permute.xlu2 %736 }
 0x80f   :  { %v739_v39 = vmul.f32 %v737_v38, %v733_v37 }
 0x811   :  { %741 = vrot.lane.b32.xlu2 %v739_v39, %s1844_s30 }
 0x818   :  { %v516_v40 = vpop.permute.xlu0 %515 }
 0x819   :  { %v518_v41 = vmul.f32 %v516_v40, %v512_v28 }
 0x81b   :  { %520 = vrot.lane.b32.xlu0 %v518_v41, %s1844_s30 }
 0x820   :  { %v624_v42 = vpop.permute.xlu1 %623 }
 0x821   :  { %v626_v43 = vmul.f32 %v624_v42, %v620_v34 }
 0x823   :  { %628 = vrot.lane.b32.xlu1 %v626_v43, %s1844_s30 }
 0x86b   :  { %v742_v45 = vpop.permute.xlu2 %741 }
 0x86c   :  { %v2153_v47 = vadd.f32 %v742_v45, %v734_v44 }
 0x86e   :  { %1770 = vtanh.f32 %v2153_v47 }
 0x874   :  { %v1771_v48 = vpop.eup %1770 }
 0x875   :  { %747 = vrot.lane.b32.xlu2 %v1771_v48, %s1843_s2 }
 0x88d   :  { %v521_v51 = vpop.permute.xlu0 %520 }
 0x88e   :  { %v2158_v52 = vadd.f32 %v521_v51, %v513_v49 }
 0x890   :  { %1772 = vtanh.f32 %v2158_v52 }
 0x895   :  { %v629_v56 = vpop.permute.xlu1 %628 }
 0x896   :  { %v1773_v57 = vpop.eup %1772  ;;  %v2162_v46 = vadd.f32 %v629_v56, %v621_v54 }
 0x897   :  { %526 = vrot.lane.b32.xlu0 %v1773_v57, %s1843_s2 }
 0x898   :  { %1774 = vtanh.f32 %v2162_v46 }
 0x89e   :  { %v1775_v58 = vpop.eup %1774 }
 0x89f   :  { %634 = vrot.lane.b32.xlu1 %v1775_v58, %s1843_s2 }
 0x8cf   :  { %v748_v59 = vpop.permute.xlu2 %747 }
 0x8d0   :  { %v750_v50 = vmul.f32 %v748_v59, %v733_v37 }
 0x8d2   :  { %772 = vrot.lane.b32.xlu2 %v750_v50, %s1844_s30 }
 0x909   :  { %v527_v60 = vpop.permute.xlu0 %526 }
 0x90a   :  { %v529_v53 = vmul.f32 %v527_v60, %v512_v28 }
 0x90c   :  { %639 = vrot.lane.b32.xlu0 %v529_v53, %s1844_s30 }
 0x911   :  { %v635_v55 = vpop.permute.xlu1 %634 }
 0x912   :  { %v637_v2 = vmul.f32 %v635_v55, %v620_v34 }
 0x914   :  { %664 = vrot.lane.b32.xlu1 %v637_v2, %s1844_s30 }
 0x92c   :  { %v773_v8 = vpop.permute.xlu2 %772 }
 0x97e   :  { %v640_v5 = vpop.permute.xlu0 %639 }
 0x97f   :  { %1677 = vmatmul.msk.f32.vlgmr.msra.gmra.mxu2 %vm150_vm6, %v640_v5 }
 0x980   :  { %1688 = vmatpush.msk.msra.mxu2 %vm154_vm1, %v2020_v63 }
 0x982   :  { %862 = vmatpush.msra.mxu2 %v2029_v0 }
 0x986   :  { %v665_v7 = vpop.permute.xlu1 %664 }
 0x987   :  { %1679 = vmatmul.msk.f32.vlgmr.msra.gmra.mxu3 %vm150_vm6, %v665_v7  ;;  %1683 = vmatmul.msk.f32.vlgmr.msrb.gmra.mxu2 %vm150_vm6, %v665_v7 }
 0x988   :  { %1690 = vmatpush.msk.msra.mxu3 %vm154_vm1, %v1916_v1  ;;  %1694 = vmatpush.msk.msrb.mxu2 %vm154_vm1, %v1954_v25 }
 0x98a   :  { %904 = vmatpush.msra.mxu3 %v1926_v3  ;;  %970 = vmatpush.msrb.mxu2 %v1968_v27 }
 0x98f   :  { %1685 = vmatmul.msk.f32.vlgmr.msrb.gmra.mxu3 %vm150_vm6, %v773_v8 }
 0x990   :  { %1696 = vmatpush.msk.msrb.mxu3 %vm154_vm1, %v2010_v61 }
 0x992   :  { %1016 = vmatpush.msrb.mxu3 %v2015_v62 }
 0x997   :  { %1691 = vmatmul.msk.f32.vlgmr.msra.gmra.mxu3 %vm150_vm6, %v773_v8 }
 0x998   :  { %1704 = vmatpush.msk.msra.mxu3 %vm154_vm1, %v1954_v25 }
 0x99a   :  { %1149 = vmatpush.msra.mxu3 %v1968_v27 }
 0xa02   :  { %v660_v9 = vpop.f32.mrf.mxu2 }
 0xa0a   :  { %v685_v11 = vpop.f32.mrf.mxu3  ;;  %v768_v16 = vpop.f32.mrf.mxu2 }
 0xa0b   :  { %v686_v12 = vadd.f32 %v685_v11, %v660_v9 }
 0xa0d   :  { %v688_v14 = vadd.f32 %v2079_v10, %v686_v12  ;;  %v115_v12 = vpop.f32.mrf.mxu0 }
 0xa0f   :  { %1776 = vtanh.f32 %v688_v14  ;;  %v116_v14 = vadd.f32 %v1934_v6, %v115_v12 }
 0xa12   :  { %v793_v17 = vpop.f32.mrf.mxu3 }
 0xa13   :  { %v794_v18 = vadd.f32 %v793_v17, %v768_v16 }
 0xa15   :  { %v1777_v20 = vpop.eup %1776  ;;  %v796_v21 = vadd.f32 %v1986_v33, %v794_v18 }
 0xa16   :  { %v690_v22 = vmul.f32 %v1777_v20, %v1937_v13 }
 0xa17   :  { %1778 = vtanh.f32 %v796_v21 }
 0xa18   :  { %v691_v28 = vadd.f32 %v690_v22, %v1939_v15 }
 0xa1a   :  { %v906_v29 = vpop.f32.mrf.mxu3  ;;  %694 = vrot.lane.b32.xlu0 %v691_v28, %s1843_s2  ;;  %v692_v51 = vmul.f32 %v691_v28, %v2158_v52 }
 0xa1b   :  { %v909_v30 = vadd.f32 %v906_v29, %v113_v23 }
 0xa1d   :  { %v1779_v31 = vpop.eup %1778  ;;  %1780 = vtanh.f32 %v909_v30 }
 0xa1e   :  { %v798_v32 = vmul.f32 %v1779_v31, %v1937_v13 }
 0xa20   :  { %v799_v34 = vadd.f32 %v798_v32, %v1939_v15 }
 0xa22   :  { %802 = vrot.lane.b32.xlu1 %v799_v34, %s1843_s2  ;;  %v800_v57 = vmul.f32 %v799_v34, %v2162_v46 }
 0xa23   :  { %v1781_v35 = vpop.eup %1780 }
 0xa24   :  { %v911_v36 = vmul.f32 %v1781_v35, %v1937_v13 }
 0xa26   :  { %v912_v37 = vadd.f32 %v911_v36, %v1939_v15 }
 0xa28   :  { %915 = vrot.lane.b32.xlu2 %v912_v37, %s1843_s2  ;;  %v913_v44 = vmul.f32 %v912_v37, %v2153_v47 }
 0xa82   :  { %v916_v38 = vpop.permute.xlu2 %915 }
 0xa83   :  { %v918_v39 = vmul.f32 %v916_v38, %v912_v37 }
 0xa85   :  { %920 = vrot.lane.b32.xlu2 %v918_v39, %s1844_s30 }
 0xa8c   :  { %v695_v40 = vpop.permute.xlu0 %694 }
 0xa8d   :  { %v697_v41 = vmul.f32 %v695_v40, %v691_v28 }
 0xa8f   :  { %699 = vrot.lane.b32.xlu0 %v697_v41, %s1844_s30 }
 0xa94   :  { %v803_v42 = vpop.permute.xlu1 %802 }
 0xa95   :  { %v805_v43 = vmul.f32 %v803_v42, %v799_v34 }
 0xa97   :  { %807 = vrot.lane.b32.xlu1 %v805_v43, %s1844_s30 }
 0xadf   :  { %v921_v45 = vpop.permute.xlu2 %920 }
 0xae0   :  { %v2210_v48 = vadd.f32 %v921_v45, %v913_v44 }
 0xae2   :  { %1782 = vtanh.f32 %v2210_v48 }
 0xae8   :  { %v1783_v49 = vpop.eup %1782 }
 0xae9   :  { %926 = vrot.lane.b32.xlu2 %v1783_v49, %s1843_s2 }
 0xb01   :  { %v700_v54 = vpop.permute.xlu0 %699 }
 0xb02   :  { %v2215_v56 = vadd.f32 %v700_v54, %v692_v51 }
 0xb04   :  { %1784 = vtanh.f32 %v2215_v56 }
 0xb09   :  { %v808_v58 = vpop.permute.xlu1 %807 }
 0xb0a   :  { %v1785_v59 = vpop.eup %1784  ;;  %v2219_v47 = vadd.f32 %v808_v58, %v800_v57 }
 0xb0b   :  { %705 = vrot.lane.b32.xlu0 %v1785_v59, %s1843_s2 }
 0xb0c   :  { %1786 = vtanh.f32 %v2219_v47 }
 0xb12   :  { %v1787_v50 = vpop.eup %1786 }
 0xb13   :  { %813 = vrot.lane.b32.xlu1 %v1787_v50, %s1843_s2 }
 0xb43   :  { %v927_v60 = vpop.permute.xlu2 %926 }
 0xb44   :  { %v929_v52 = vmul.f32 %v927_v60, %v912_v37 }
 0xb46   :  { %951 = vrot.lane.b32.xlu2 %v929_v52, %s1844_s30 }
 0xb7d   :  { %v706_v53 = vpop.permute.xlu0 %705 }
 0xb7e   :  { %v708_v55 = vmul.f32 %v706_v53, %v691_v28 }
 0xb80   :  { %818 = vrot.lane.b32.xlu0 %v708_v55, %s1844_s30  ;;  %v47_v55 = vld [vmem:[%s2439_s0 + $0x30] sm:$0xff] }
 0xb81   :  { %1651 = vmatmul.msk.f32.gmra.mxu0 %vm54_vm2, %v47_v55 }
 0xb85   :  { %v814_v46 = vpop.permute.xlu1 %813 }
 0xb86   :  { %v816_v2 = vmul.f32 %v814_v46, %v799_v34 }
 0xb88   :  { %843 = vrot.lane.b32.xlu1 %v816_v2, %s1844_s30 }
 0xba0   :  { %v952_v8 = vpop.permute.xlu2 %951 }
 0xbf2   :  { %v819_v5 = vpop.permute.xlu0 %818 }
 0xbf3   :  { %1687 = vmatmul.msk.f32.vlgmr.msra.gmra.mxu1 %vm150_vm6, %v819_v5  ;;  %v48_v5 = vld [vmem:[%s2439_s0 + $0x38] sm:$0xff] }
 0xbf4   :  { %1700 = vmatpush.msk.msra.mxu1 %vm154_vm1, %v1916_v1  ;;  %1652 = vmatmul.msk.f32.gmra.mxu0 %vm54_vm2, %v48_v5 }
 0xbf6   :  { %1083 = vmatpush.msra.mxu1 %v1926_v3 }
 0xbfa   :  { %v844_v7 = vpop.permute.xlu1 %843 }
 0xbfb   :  { %1689 = vmatmul.msk.f32.vlgmr.msra.gmra.mxu2 %vm150_vm6, %v844_v7  ;;  %1693 = vmatmul.msk.f32.vlgmr.msrb.gmra.mxu1 %vm150_vm6, %v844_v7 }
 0xbfc   :  { %1702 = vmatpush.msk.msra.mxu2 %vm154_vm1, %v1949_v24  ;;  %1708 = vmatpush.msk.msrb.mxu1 %vm154_vm1, %v2020_v63 }
 0xbfe   :  { %1124 = vmatpush.msra.mxu2 %v1959_v26  ;;  %1220 = vmatpush.msrb.mxu1 %v2029_v0 }
 0xc03   :  { %1695 = vmatmul.msk.f32.vlgmr.msrb.gmra.mxu2 %vm150_vm6, %v952_v8  ;;  %1701 = vmatmul.msk.f32.vlgmr.msra.gmra.mxu1 %vm150_vm6, %v952_v8 }
 0xc04   :  { %1710 = vmatpush.msk.msrb.mxu2 %vm154_vm1, %v1916_v1  ;;  %1716 = vmatpush.msk.msra.mxu1 %vm154_vm1, %v2010_v61 }
 0xc06   :  { %1262 = vmatpush.msrb.mxu2 %v1926_v3  ;;  %1374 = vmatpush.msra.mxu1 %v2015_v62 }
 0xc70   :  { %v839_v9 = vpop.f32.mrf.mxu1 }
 0xc78   :  { %v947_v11 = vpop.f32.mrf.mxu1 }
 0xc7e   :  { %v864_v16 = vpop.f32.mrf.mxu2 }
 0xc7f   :  { %v865_v17 = vadd.f32 %v864_v16, %v839_v9 }
 0xc80   :  { %v1085_v18 = vpop.f32.mrf.mxu1 }
 0xc81   :  { %v867_v19 = vadd.f32 %v2079_v10, %v865_v17  ;;  %v1088_v20 = vadd.f32 %v1085_v18, %v116_v14 }
 0xc83   :  { %1788 = vtanh.f32 %v867_v19 }
 0xc84   :  { %1790 = vtanh.f32 %v1088_v20 }
 0xc86   :  { %v972_v21 = vpop.f32.mrf.mxu2 }
 0xc87   :  { %v973_v22 = vadd.f32 %v972_v21, %v947_v11 }
 0xc89   :  { %v1789_v23 = vpop.eup %1788  ;;  %v975_v28 = vadd.f32 %v1986_v33, %v973_v22 }
 0xc8a   :  { %v1791_v29 = vpop.eup %1790  ;;  %v869_v30 = vmul.f32 %v1789_v23, %v1937_v13 }
 0xc8b   :  { %v1090_v31 = vmul.f32 %v1791_v29, %v1937_v13  ;;  %1792 = vtanh.f32 %v975_v28 }
 0xc8c   :  { %v870_v32 = vadd.f32 %v869_v30, %v1939_v15 }
 0xc8d   :  { %v1091_v34 = vadd.f32 %v1090_v31, %v1939_v15 }
 0xc8e   :  { %873 = vrot.lane.b32.xlu0 %v870_v32, %s1843_s2  ;;  %v871_v54 = vmul.f32 %v870_v32, %v2215_v56 }
 0xc8f   :  { %1094 = vrot.lane.b32.xlu2 %v1091_v34, %s1843_s2  ;;  %v1092_v44 = vmul.f32 %v1091_v34, %v2210_v48 }
 0xc91   :  { %v1793_v35 = vpop.eup %1792 }
 0xc92   :  { %v977_v36 = vmul.f32 %v1793_v35, %v1937_v13 }
 0xc94   :  { %v978_v37 = vadd.f32 %v977_v36, %v1939_v15 }
 0xc96   :  { %981 = vrot.lane.b32.xlu1 %v978_v37, %s1843_s2  ;;  %v979_v59 = vmul.f32 %v978_v37, %v2219_v47 }
 0xce9   :  { %v1095_v38 = vpop.permute.xlu2 %1094 }
 0xcea   :  { %v1097_v39 = vmul.f32 %v1095_v38, %v1091_v34 }
 0xcec   :  { %1099 = vrot.lane.b32.xlu2 %v1097_v39, %s1844_s30 }
 0xd00   :  { %v874_v40 = vpop.permute.xlu0 %873 }
 0xd01   :  { %v876_v41 = vmul.f32 %v874_v40, %v870_v32 }
 0xd03   :  { %878 = vrot.lane.b32.xlu0 %v876_v41, %s1844_s30 }
 0xd08   :  { %v982_v42 = vpop.permute.xlu1 %981 }
 0xd09   :  { %v984_v43 = vmul.f32 %v982_v42, %v978_v37 }
 0xd0b   :  { %986 = vrot.lane.b32.xlu1 %v984_v43, %s1844_s30 }
 0xd46   :  { %v1100_v45 = vpop.permute.xlu2 %1099 }
 0xd47   :  { %v2267_v49 = vadd.f32 %v1100_v45, %v1092_v44 }
 0xd49   :  { %1794 = vtanh.f32 %v2267_v49 }
 0xd4f   :  { %v1795_v51 = vpop.eup %1794 }
 0xd50   :  { %1105 = vrot.lane.b32.xlu2 %v1795_v51, %s1843_s2 }
 0xd75   :  { %v879_v57 = vpop.permute.xlu0 %878 }
 0xd76   :  { %v2272_v58 = vadd.f32 %v879_v57, %v871_v54 }
 0xd78   :  { %1796 = vtanh.f32 %v2272_v58 }
 0xd7d   :  { %v987_v50 = vpop.permute.xlu1 %986 }
 0xd7e   :  { %v1797_v60 = vpop.eup %1796  ;;  %v2276_v48 = vadd.f32 %v987_v50, %v979_v59 }
 0xd7f   :  { %884 = vrot.lane.b32.xlu0 %v1797_v60, %s1843_s2 }
 0xd80   :  { %1798 = vtanh.f32 %v2276_v48 }
 0xd86   :  { %v1799_v52 = vpop.eup %1798 }
 0xd87   :  { %992 = vrot.lane.b32.xlu1 %v1799_v52, %s1843_s2 }
 0xdaa   :  { %v1106_v53 = vpop.permute.xlu2 %1105 }
 0xdab   :  { %v1108_v56 = vmul.f32 %v1106_v53, %v1091_v34 }
 0xdad   :  { %1130 = vrot.lane.b32.xlu2 %v1108_v56, %s1844_s30 }
 0xdf1   :  { %v885_v47 = vpop.permute.xlu0 %884 }
 0xdf2   :  { %v887_v46 = vmul.f32 %v885_v47, %v870_v32 }
 0xdf4   :  { %997 = vrot.lane.b32.xlu0 %v887_v46, %s1844_s30  ;;  %v1836_v46 = vld [vmem:[%s2442_s4 + $0x8] sm:$0x3] }
 0xdf9   :  { %v993_v2 = vpop.permute.xlu1 %992 }
 0xdfa   :  { %v995_v4 = vmul.f32 %v993_v2, %v978_v37 }
 0xdfc   :  { %1022 = vrot.lane.b32.xlu1 %v995_v4, %s1844_s30 }
 0xe07   :  { %v1131_v9 = vpop.permute.xlu2 %1130 }
 0xe66   :  { %v998_v7 = vpop.permute.xlu0 %997 }
 0xe67   :  { %1697 = vmatmul.msk.f32.vlgmr.msrb.gmra.mxu3 %vm150_vm6, %v998_v7 }
 0xe68   :  { %1712 = vmatpush.msk.msrb.mxu3 %vm154_vm1, %v1949_v24 }
 0xe6a   :  { %1303 = vmatpush.msrb.mxu3 %v1959_v26 }
 0xe6e   :  { %v1023_v8 = vpop.permute.xlu1 %1022 }
 0xe6f   :  { %1699 = vmatmul.msk.f32.vlgmr.msrb.gmra.mxu0 %vm150_vm6, %v1023_v8  ;;  %1703 = vmatmul.msk.f32.vlgmr.msra.gmra.mxu2 %vm150_vm6, %v1023_v8 }
 0xe70   :  { %1705 = vmatmul.msk.f32.vlgmr.msra.gmra.mxu3 %vm150_vm6, %v1131_v9  ;;  %1714 = vmatpush.msk.msrb.mxu0 %vm154_vm1, %v1954_v25  ;;  %v118_v25 = vpop.f32.mrf.mxu0 }
 0xe71   :  { %1720 = vmatpush.msk.msra.mxu3 %vm154_vm1, %v1916_v1  ;;  %1718 = vmatpush.msk.msra.mxu2 %vm154_vm1, %v2020_v63 }
 0xe72   :  { %1328 = vmatpush.msrb.mxu0 %v1968_v27 }
 0xe73   :  { %1441 = vmatpush.msra.mxu3 %v1926_v3  ;;  %1399 = vmatpush.msra.mxu2 %v2029_v0 }
 0xe77   :  { %1711 = vmatmul.msk.f32.vlgmr.msrb.gmra.mxu2 %vm150_vm6, %v1131_v9 }
 0xe78   :  { %1726 = vmatpush.msk.msrb.mxu2 %vm154_vm1, %v2010_v61  ;;  %v2312_v11 = vpop.f32.mrf.mxu0 }
 0xe7a   :  { %1553 = vmatpush.msrb.mxu2 %v2015_v62  ;;  %v119_v62 = vadd.f32 %v1934_v6, %v118_v25 }
 0xeea   :  { %v1018_v1 = vpop.f32.mrf.mxu3 }
 0xeec   :  { %v1043_v12 = vpop.f32.mrf.mxu0 }
 0xeed   :  { %v1044_v14 = vadd.f32 %v1043_v12, %v1018_v1 }
 0xeef   :  { %v1046_v16 = vadd.f32 %v2079_v10, %v1044_v14 }
 0xef1   :  { %1800 = vtanh.f32 %v1046_v16 }
 0xef2   :  { %v1126_v27 = vpop.f32.mrf.mxu2 }
 0xef3   :  { %v1151_v3 = vpop.f32.mrf.mxu3 }
 0xef4   :  { %v1152_v17 = vadd.f32 %v1151_v3, %v1126_v27 }
 0xef6   :  { %v1154_v18 = vadd.f32 %v1986_v33, %v1152_v17 }
 0xef7   :  { %v1801_v19 = vpop.eup %1800 }
 0xef8   :  { %1802 = vtanh.f32 %v1154_v18  ;;  %v1048_v61 = vmul.f32 %v1801_v19, %v1937_v13 }
 0xefa   :  { %v1264_v20 = vpop.f32.mrf.mxu2  ;;  %v1049_v21 = vadd.f32 %v1048_v61, %v1939_v15 }
 0xefb   :  { %v1267_v22 = vadd.f32 %v1264_v20, %v119_v62 }
 0xefc   :  { %1052 = vrot.lane.b32.xlu0 %v1049_v21, %s1843_s2  ;;  %v1050_v43 = vmul.f32 %v1049_v21, %v2272_v58 }
 0xefd   :  { %1804 = vtanh.f32 %v1267_v22 }
 0xefe   :  { %v1803_v23 = vpop.eup %1802 }
 0xeff   :  { %v1156_v28 = vmul.f32 %v1803_v23, %v1937_v13 }
 0xf01   :  { %v1157_v29 = vadd.f32 %v1156_v28, %v1939_v15 }
 0xf03   :  { %v1805_v30 = vpop.eup %1804  ;;  %1160 = vrot.lane.b32.xlu1 %v1157_v29, %s1843_s2  ;;  %v1158_v51 = vmul.f32 %v1157_v29, %v2276_v48 }
 0xf04   :  { %v1269_v31 = vmul.f32 %v1805_v30, %v1937_v13 }
 0xf06   :  { %v1270_v32 = vadd.f32 %v1269_v31, %v1939_v15 }
 0xf08   :  { %1273 = vrot.lane.b32.xlu2 %v1270_v32, %s1843_s2  ;;  %v1271_v39 = vmul.f32 %v1270_v32, %v2267_v49 }
 0xf62   :  { %v1274_v6 = vpop.permute.xlu2 %1273 }
 0xf63   :  { %v1276_v34 = vmul.f32 %v1274_v6, %v1270_v32 }
 0xf65   :  { %1278 = vrot.lane.b32.xlu2 %v1276_v34, %s1844_s30 }
 0xf6e   :  { %v1053_v35 = vpop.permute.xlu0 %1052 }
 0xf6f   :  { %v1055_v36 = vmul.f32 %v1053_v35, %v1049_v21 }
 0xf71   :  { %1057 = vrot.lane.b32.xlu0 %v1055_v36, %s1844_s30 }
 0xf75   :  { %v1161_v37 = vpop.permute.xlu1 %1160 }
 0xf76   :  { %v1163_v38 = vmul.f32 %v1161_v37, %v1157_v29 }
 0xf78   :  { %1165 = vrot.lane.b32.xlu1 %v1163_v38, %s1844_s30 }
 0xfbf   :  { %v1279_v40 = vpop.permute.xlu2 %1278 }
 0xfc0   :  { %v2330_v41 = vadd.f32 %v1279_v40, %v1271_v39 }
 0xfc2   :  { %1806 = vtanh.f32 %v2330_v41 }
 0xfc8   :  { %v1807_v42 = vpop.eup %1806 }
 0xfc9   :  { %1284 = vrot.lane.b32.xlu2 %v1807_v42, %s1843_s2 }
 0xfe3   :  { %v1058_v44 = vpop.permute.xlu0 %1057 }
 0xfe4   :  { %v2335_v45 = vadd.f32 %v1058_v44, %v1050_v43 }
 0xfe6   :  { %1808 = vtanh.f32 %v2335_v45 }
 0xfea   :  { %v1166_v54 = vpop.permute.xlu1 %1165 }
 0xfeb   :  { %v2339_v57 = vadd.f32 %v1166_v54, %v1158_v51 }
 0xfec   :  { %v1809_v49 = vpop.eup %1808 }
 0xfed   :  { %1810 = vtanh.f32 %v2339_v57  ;;  %1063 = vrot.lane.b32.xlu0 %v1809_v49, %s1843_s2 }
 0xff3   :  { %v1811_v59 = vpop.eup %1810 }
 0xff4   :  { %1171 = vrot.lane.b32.xlu1 %v1811_v59, %s1843_s2 }
0x1023   :  { %v1285_v50 = vpop.permute.xlu2 %1284 }
0x1024   :  { %v1287_v58 = vmul.f32 %v1285_v50, %v1270_v32 }
0x1026   :  { %1309 = vrot.lane.b32.xlu2 %v1287_v58, %s1844_s30 }
0x105f   :  { %v1064_v60 = vpop.permute.xlu0 %1063 }
0x1060   :  { %v1066_v52 = vmul.f32 %v1064_v60, %v1049_v21  ;;  %v1839_v60 = vld [vmem:[%s2443_s6] ss:$0 sm:$0xff] }
0x1062   :  { %1176 = vrot.lane.b32.xlu0 %v1066_v52, %s1844_s30 }
0x1066   :  { %v1172_v48 = vpop.permute.xlu1 %1171 }
0x1067   :  { %v1174_v53 = vmul.f32 %v1172_v48, %v1157_v29 }
0x1069   :  { %1201 = vrot.lane.b32.xlu1 %v1174_v53, %s1844_s30 }
0x1080   :  { %v1310_v47 = vpop.permute.xlu2 %1309 }
0x10d4   :  { %v1177_v56 = vpop.permute.xlu0 %1176 }
0x10d5   :  { %1707 = vmatmul.msk.f32.vlgmr.msra.gmra.mxu0 %vm150_vm6, %v1177_v56 }
0x10d6   :  { %1722 = vmatpush.msk.msra.mxu0 %vm154_vm1, %v1949_v24  ;;  %v1837_v24 = vld [vmem:[%s2442_s4] sm:$0xff] }
0x10d8   :  { %1482 = vmatpush.msra.mxu0 %v1959_v26 }
0x10db   :  { %v1202_v55 = vpop.permute.xlu1 %1201 }
0x10dc   :  { %1709 = vmatmul.msk.f32.vlgmr.msrb.gmra.mxu1 %vm150_vm6, %v1202_v55  ;;  %1713 = vmatmul.msk.f32.vlgmr.msrb.gmra.mxu3 %vm150_vm6, %v1202_v55 }
0x10dd   :  { %1715 = vmatmul.msk.f32.vlgmr.msrb.gmra.mxu0 %vm150_vm6, %v1310_v47  ;;  %1724 = vmatpush.msk.msrb.mxu1 %vm154_vm1, %v1836_v46 }
0x10de   :  { %1728 = vmatpush.msk.msrb.mxu3 %vm154_vm1, %v2020_v63 }
0x10df   :  { %1507 = vmatpush.msrb.mxu1 %v1837_v24 }
0x10e0   :  { %1578 = vmatpush.msrb.mxu3 %v2029_v0  ;;  %v1838_v0 = vld [vmem:[%s2440_s3] ss:$0 sm:$0xff] }
0x10e1   :  { %v122_v12 = vadd.f32 %v1838_v0, %v2312_v11 }
0x10e4   :  { %1721 = vmatmul.msk.f32.vlgmr.msra.gmra.mxu3 %vm150_vm6, %v1310_v47 }
0x1152   :  { %v1197_v26 = vpop.f32.mrf.mxu0 }
0x1159   :  { %v1222_v2 = vpop.f32.mrf.mxu1 }
0x115a   :  { %v1223_v4 = vadd.f32 %v1222_v2, %v1197_v26  ;;  %v1330_v7 = vpop.f32.mrf.mxu0 }
0x115c   :  { %v1225_v5 = vadd.f32 %v2079_v10, %v1223_v4 }
0x115e   :  { %1812 = vtanh.f32 %v1225_v5 }
0x115f   :  { %v1305_v8 = vpop.f32.mrf.mxu3 }
0x1160   :  { %v1331_v9 = vadd.f32 %v1330_v7, %v1305_v8 }
0x1162   :  { %v1333_v63 = vadd.f32 %v1986_v33, %v1331_v9 }
0x1164   :  { %v1813_v25 = vpop.eup %1812  ;;  %1814 = vtanh.f32 %v1333_v63 }
0x1165   :  { %v1227_v1 = vmul.f32 %v1813_v25, %v1937_v13 }
0x1167   :  { %v1443_v14 = vpop.f32.mrf.mxu3  ;;  %v1228_v16 = vadd.f32 %v1227_v1, %v1939_v15 }
0x1168   :  { %v1446_v27 = vadd.f32 %v1443_v14, %v122_v12 }
0x1169   :  { %1231 = vrot.lane.b32.xlu0 %v1228_v16, %s1843_s2  ;;  %v1229_v32 = vmul.f32 %v1228_v16, %v2335_v45 }
0x116a   :  { %v1815_v3 = vpop.eup %1814  ;;  %1816 = vtanh.f32 %v1446_v27 }
0x116b   :  { %v1335_v33 = vmul.f32 %v1815_v3, %v1937_v13 }
0x116d   :  { %v1336_v17 = vadd.f32 %v1335_v33, %v1939_v15 }
0x116f   :  { %1339 = vrot.lane.b32.xlu1 %v1336_v17, %s1843_s2  ;;  %v1337_v35 = vmul.f32 %v1336_v17, %v2339_v57 }
0x1170   :  { %v1817_v18 = vpop.eup %1816 }
0x1171   :  { %v1448_v19 = vmul.f32 %v1817_v18, %v1937_v13 }
0x1173   :  { %v1449_v61 = vadd.f32 %v1448_v19, %v1939_v15 }
0x1175   :  { %1452 = vrot.lane.b32.xlu2 %v1449_v61, %s1843_s2  ;;  %v1450_v28 = vmul.f32 %v1449_v61, %v2330_v41 }
0x11cf   :  { %v1453_v11 = vpop.permute.xlu2 %1452 }
0x11d0   :  { %v1455_v62 = vmul.f32 %v1453_v11, %v1449_v61 }
0x11d2   :  { %1457 = vrot.lane.b32.xlu2 %v1455_v62, %s1844_s30  ;;  %v1840_v62 = vld [vmem:[%s2446_s9] ss:$0 sm:$0xff] }
0x11db   :  { %v1232_v20 = vpop.permute.xlu0 %1231 }
0x11dc   :  { %v1234_v21 = vmul.f32 %v1232_v20, %v1228_v16 }
0x11de   :  { %1236 = vrot.lane.b32.xlu0 %v1234_v21, %s1844_s30 }
0x11e1   :  { %v1340_v22 = vpop.permute.xlu1 %1339 }
0x11e2   :  { %v1342_v23 = vmul.f32 %v1340_v22, %v1336_v17 }
0x11e4   :  { %1344 = vrot.lane.b32.xlu1 %v1342_v23, %s1844_s30 }
0x122c   :  { %v1458_v29 = vpop.permute.xlu2 %1457 }
0x122d   :  { %v1460_v30 = vadd.f32 %v1458_v29, %v1450_v28 }
0x122f   :  { %1818 = vtanh.f32 %v1460_v30 }
0x1235   :  { %v1819_v31 = vpop.eup %1818 }
0x1236   :  { %1463 = vrot.lane.b32.xlu2 %v1819_v31, %s1843_s2 }
0x1250   :  { %v1237_v6 = vpop.permute.xlu0 %1236 }
0x1251   :  { %v1239_v34 = vadd.f32 %v1237_v6, %v1229_v32 }
0x1253   :  { %1820 = vtanh.f32 %v1239_v34 }
0x1256   :  { %v1345_v36 = vpop.permute.xlu1 %1344 }
0x1257   :  { %v1347_v37 = vadd.f32 %v1345_v36, %v1337_v35 }
0x1259   :  { %v1821_v38 = vpop.eup %1820  ;;  %1822 = vtanh.f32 %v1347_v37 }
0x125a   :  { %1242 = vrot.lane.b32.xlu0 %v1821_v38, %s1843_s2 }
0x125f   :  { %v1823_v39 = vpop.eup %1822 }
0x1260   :  { %1350 = vrot.lane.b32.xlu1 %v1823_v39, %s1843_s2 }
0x1290   :  { %v1464_v40 = vpop.permute.xlu2 %1463 }
0x1291   :  { %v1466_v41 = vmul.f32 %v1464_v40, %v1449_v61 }
0x1293   :  { %1488 = vrot.lane.b32.xlu2 %v1466_v41, %s1844_s30 }
0x12cc   :  { %v1243_v42 = vpop.permute.xlu0 %1242 }
0x12cd   :  { %v1245_v43 = vmul.f32 %v1243_v42, %v1228_v16 }
0x12cf   :  { %1355 = vrot.lane.b32.xlu0 %v1245_v43, %s1844_s30 }
0x12d2   :  { %v1351_v44 = vpop.permute.xlu1 %1350 }
0x12d3   :  { %v1353_v45 = vmul.f32 %v1351_v44, %v1336_v17 }
0x12d5   :  { %1380 = vrot.lane.b32.xlu1 %v1353_v45, %s1844_s30 }
0x12ed   :  { %v1489_v57 = vpop.permute.xlu2 %1488 }
0x1341   :  { %v1356_v51 = vpop.permute.xlu0 %1355 }
0x1342   :  { %1717 = vmatmul.msk.f32.vlgmr.msra.gmra.mxu1 %vm150_vm6, %v1356_v51 }
0x1347   :  { %v1381_v54 = vpop.permute.xlu1 %1380 }
0x1348   :  { %1719 = vmatmul.msk.f32.vlgmr.msra.gmra.mxu2 %vm150_vm6, %v1381_v54  ;;  %1723 = vmatmul.msk.f32.vlgmr.msra.gmra.mxu0 %vm150_vm6, %v1381_v54 }
0x134a   :  { %1725 = vmatmul.msk.f32.vlgmr.msrb.gmra.mxu1 %vm150_vm6, %v1489_v57 }
0x13bf   :  { %v1376_v49 = vpop.f32.mrf.mxu1 }
0x13c5   :  { %v1484_v59 = vpop.f32.mrf.mxu0 }
0x13c7   :  { %v1509_v50 = vpop.f32.mrf.mxu1 }
0x13c8   :  { %v1510_v58 = vadd.f32 %v1509_v50, %v1484_v59 }
0x13ca   :  { %v1512_v52 = vadd.f32 %v1839_v60, %v1510_v58 }
0x13cb   :  { %v1401_v48 = vpop.f32.mrf.mxu2 }
0x13cc   :  { %1824 = vtanh.f32 %v1512_v52  ;;  %v1402_v53 = vadd.f32 %v1401_v48, %v1376_v49 }
0x13ce   :  { %v1404_v56 = vadd.f32 %v2079_v10, %v1402_v53 }
0x13d0   :  { %1826 = vtanh.f32 %v1404_v56 }
0x13d2   :  { %v1825_v55 = vpop.eup %1824 }
0x13d3   :  { %v1514_v47 = vmul.f32 %v1825_v55, %v1937_v13 }
0x13d5   :  { %v1515_v46 = vadd.f32 %v1514_v47, %v1939_v15 }
0x13d6   :  { %v1827_v24 = vpop.eup %1826 }
0x13d7   :  { %1518 = vrot.lane.b32.xlu1 %v1515_v46, %s1843_s2  ;;  %v1406_v26 = vmul.f32 %v1827_v24, %v1937_v13  ;;  %v1516_v1 = vmul.f32 %v1515_v46, %v1347_v37  ;;  %v1739_v37 = vld [vmem:[%s2447_s11] ss:$0 sm:$0xff] }
0x13d9   :  { %v1407_v2 = vadd.f32 %v1406_v26, %v1939_v15 }
0x13db   :  { %1410 = vrot.lane.b32.xlu0 %v1407_v2, %s1843_s2  ;;  %v1408_v8 = vmul.f32 %v1407_v2, %v1239_v34  ;;  %v1605_v34 = vld [vmem:[%s2448_s10 + $0x8] sm:$0x3] }
0x13dc   :  { %1730 = vmatpush.msk.msrb.mxu0 %vm154_vm1, %v1605_v34 }
0x1449   :  { %v1519_v4 = vpop.permute.xlu1 %1518 }
0x144a   :  { %v1521_v5 = vmul.f32 %v1519_v4, %v1515_v46 }
0x144c   :  { %1523 = vrot.lane.b32.xlu0 %v1521_v5, %s1844_s30 }
0x144d   :  { %v1411_v10 = vpop.permute.xlu0 %1410 }
0x144e   :  { %v1413_v7 = vmul.f32 %v1411_v10, %v1407_v2 }
0x1450   :  { %1415 = vrot.lane.b32.xlu2 %v1413_v7, %s1844_s30 }
0x14aa   :  { %v1416_v9 = vpop.permute.xlu2 %1415 }
0x14ab   :  { %v1418_v63 = vadd.f32 %v1416_v9, %v1408_v8 }
0x14ad   :  { %1828 = vtanh.f32 %v1418_v63 }
0x14b3   :  { %v1829_v25 = vpop.eup %1828 }
0x14b4   :  { %1421 = vrot.lane.b32.xlu1 %v1829_v25, %s1843_s2 }
0x14be   :  { %v1524_v0 = vpop.permute.xlu0 %1523 }
0x14bf   :  { %v1526_v12 = vadd.f32 %v1524_v0, %v1516_v1 }
0x14c1   :  { %1830 = vtanh.f32 %v1526_v12 }
0x14c7   :  { %v1831_v14 = vpop.eup %1830 }
0x14c8   :  { %1529 = vrot.lane.b32.xlu2 %v1831_v14, %s1843_s2 }
0x1522   :  { %v1530_v16 = vpop.permute.xlu2 %1529 }
0x1523   :  { %v1532_v27 = vmul.f32 %v1530_v16, %v1515_v46 }
0x1525   :  { %1559 = vrot.lane.b32.xlu1 %v1532_v27, %s1844_s30 }
0x1526   :  { %v1422_v3 = vpop.permute.xlu1 %1421 }
0x1527   :  { %v1424_v33 = vmul.f32 %v1422_v3, %v1407_v2 }
0x1529   :  { %1534 = vrot.lane.b32.xlu0 %v1424_v33, %s1844_s30 }
0x1597   :  { %v1560_v17 = vpop.permute.xlu1 %1559 }
0x1598   :  { %1729 = vmatmul.msk.f32.vlgmr.msrb.gmra.mxu3 %vm150_vm6, %v1560_v17 }
0x159b   :  { %v1535_v18 = vpop.permute.xlu0 %1534 }
0x159c   :  { %1727 = vmatmul.msk.f32.vlgmr.msrb.gmra.mxu2 %vm150_vm6, %v1535_v18 }
0x161b   :  { %v1580_v19 = vpop.f32.mrf.mxu3 }
0x161f   :  { %v1555_v61 = vpop.f32.mrf.mxu2 }
0x1620   :  { %v1581_v11 = vadd.f32 %v1580_v19, %v1555_v61 }
0x1622   :  { %v1583_v20 = vadd.f32 %v1840_v62, %v1581_v11 }
0x1624   :  { %1832 = vtanh.f32 %v1583_v20 }
0x162a   :  { %v1833_v21 = vpop.eup %1832 }
0x162b   :  { %v1585_v22 = vmul.f32 %v1833_v21, %v1937_v13  ;;  %v1604_v13 = vld [vmem:[%s2448_s10] sm:$0xff] }
0x162c   :  { %1633 = vmatpush.msrb.mxu0 %v1604_v13 }
0x162d   :  { %v1586_v23 = vadd.f32 %v1585_v22, %v1939_v15 }
0x162f   :  { %1589 = vrot.lane.b32.xlu2 %v1586_v23, %s1843_s2  ;;  %v1587_v30 = vmul.f32 %v1586_v23, %v1418_v63 }
0x1689   :  { %v1590_v28 = vpop.permute.xlu2 %1589 }
0x168a   :  { %v1592_v29 = vmul.f32 %v1590_v28, %v1586_v23 }
0x168c   :  { %1594 = vrot.lane.b32.xlu0 %v1592_v29, %s1844_s30 }
0x16fe   :  { %v1595_v31 = vpop.permute.xlu0 %1594 }
0x16ff   :  { %v1597_v32 = vadd.f32 %v1595_v31, %v1587_v30 }
0x1701   :  { %1834 = vtanh.f32 %v1597_v32 }
0x1707   :  { %v1835_v6 = vpop.eup %1834 }
0x1708   :  { %1600 = vrot.lane.b32.xlu1 %v1835_v6, %s1843_s2 }
0x177a   :  { %v1601_v15 = vpop.permute.xlu1 %1600 }
0x177b   :  { %v1603_v35 = vmul.f32 %v1601_v15, %v1586_v23 }
0x177d   :  { %1611 = vrot.lane.b32.xlu2 %v1603_v35, %s1844_s30 }
0x17d7   :  { %v1612_v36 = vpop.permute.xlu2 %1611 }
0x17d8   :  { %1731 = vmatmul.msk.f32.vlgmr.msrb.gmra.mxu0 %vm150_vm6, %v1612_v36 }
0x1855   :  { %v1635_v38 = vpop.f32.mrf.mxu0 }
0x1856   :  { %v1636_v39 = vadd.f32 %v1739_v37, %v1635_v38 }
0x1858   :  { %1639 = vst.msk [vmem:[%s2449_s12] sm:$0xff] %vm1638_vm7, %v1636_v39 }

</bundles_post_ra>
